<compile_context>
chip_gen: v6e
topology: v6e:2x2x1
jax: 0.10.0
libtpu: 0.0.40
codegen_flags: <defaults>
</compile_context>

<pallas_src>
import functools

import jax
import jax.numpy as jnp
import numpy as np
from jax import lax
from jax.experimental import pallas as pl
from jax.experimental.pallas import tpu as pltpu


# ----------------------------------------------------------------------------
# Fully fused MHA kernel: single invocation, everything resident in VMEM.
# ----------------------------------------------------------------------------
def _mha_fused_kernel(x_ref, wqkv_ref, bqkv_ref, wfc_ref, bfc_ref, gamma_ref,
                      beta_ref, out_ref,
                      qkv3_scr, heads_scr, ctxb_scr, ctx2_scr,
                      *, num_head, dim_head, rps, n_batch, scale, eps):
    H, dh = num_head, dim_head
    BH = n_batch * H                      # number of "view heads" (B*H)

    # ---- 1. fused QKV projection: ONE (B*S, D) @ (D, 3D) MXU pass ----------
    x2 = x_ref[...]                                               # (B*S, D)
    qkv2 = jnp.dot(x2, wqkv_ref[...],
                   preferred_element_type=jnp.float32) + bqkv_ref[...]  # (B*S, 3D)

    # ---- 2. relayout to per-view-head blocks (copy-only, no MXU work) ------
    # PyTorch's .view(B*H, S, dh) maps projection row bh*rps + i, dh-chunk g
    # to view-head bh, position t = i*H + g.  Static-slice copies only
    # (no reshapes / transposes); plain Python loops are fine here because
    # each iteration writes straight to a scratch ref (no carried values).
    for bh in range(BH):
        qkv3_scr[bh] = qkv2[bh * rps:(bh + 1) * rps, :]           # (rps, 3D)

    # w_qkv is packed per dh-chunk g as [q_g | k_g | v_g] (3*dh wide), so one
    # slice per (i, g) moves q, k and v for that position together.
    for i in range(rps):
        for g in range(H):
            t = i * H + g
            heads_scr[:, t:t + 1, :] = qkv3_scr[:, i:i + 1,
                                                g * 3 * dh:(g + 1) * 3 * dh]

    q3 = heads_scr[:, :, 0:dh]                                    # (BH, S, dh)
    k3 = heads_scr[:, :, dh:2 * dh]
    v3 = heads_scr[:, :, 2 * dh:3 * dh]

    # ---- 3. scaled dot-product attention, batched over all B*H heads -------
    s = lax.dot_general(q3, k3,                    # contract last dims, no K.T
                        dimension_numbers=(((2,), (2,)), ((0,), (0,))),
                        preferred_element_type=jnp.float32) * scale   # (BH,S,S)
    s = s - jnp.max(s, axis=-1, keepdims=True)
    p = jnp.exp(s)
    p = p / jnp.sum(p, axis=-1, keepdims=True)     # exact (no approx recip)
    ctx3 = lax.dot_general(p, v3,
                           dimension_numbers=(((2,), (1,)), ((0,), (0,))),
                           preferred_element_type=jnp.float32)        # (BH,S,dh)

    # ---- 4. inverse relayout: view-heads -> original (B*S, D) row layout ---
    for i in range(rps):
        for g in range(H):
            t = i * H + g
            ctxb_scr[:, i:i + 1, g * dh:(g + 1) * dh] = ctx3[:, t:t + 1, :]
    for bh in range(BH):
        ctx2_scr[bh * rps:(bh + 1) * rps, :] = ctxb_scr[bh]

    # ---- 5. output projection + residual + LayerNorm (one MXU pass) --------
    y = jnp.dot(ctx2_scr[...], wfc_ref[...],
                preferred_element_type=jnp.float32) + bfc_ref[...] + x2
    mean = jnp.mean(y, axis=-1, keepdims=True)
    var = jnp.mean((y - mean) * (y - mean), axis=-1, keepdims=True)
    y = (y - mean) * lax.rsqrt(var + eps)
    out_ref[...] = y * gamma_ref[...] + beta_ref[...]


# ----------------------------------------------------------------------------
# Wrapper: free host/HBM-level packing + a single grid-less pallas_call.
# ----------------------------------------------------------------------------
def multi_head_attention_forward(x, params, num_head):
    b, s_len, d = x.shape
    assert d % num_head == 0
    dh = d // num_head
    # The relayout assumes each view-head covers whole rows of x,
    # i.e. seq_len % num_head == 0 (holds for this module's usage).
    assert s_len % num_head == 0
    rps = s_len // num_head
    scale = float(dh) ** (-0.5)

    # ---- host-side (free) weight packing: interleaved [q_g | k_g | v_g] ----
    def chunks(w):                                  # (D, D) -> (D, H, dh)
        return w.reshape(d, num_head, dh)

    w_qkv = jnp.concatenate(
        [chunks(params["w_q"]), chunks(params["w_k"]), chunks(params["w_v"])],
        axis=-1).reshape(d, 3 * d)                  # (D, 3D), per-chunk interleave
    b_qkv = jnp.concatenate(
        [params["b_q"].reshape(num_head, dh),
         params["b_k"].reshape(num_head, dh),
         params["b_v"].reshape(num_head, dh)], axis=-1).reshape(1, 3 * d)

    w_fc = params["w_fc"]
    b_fc = params["b_fc"].reshape(1, d)
    gamma = params["ln_gamma"].reshape(1, d)
    beta = params["ln_beta"].reshape(1, d)

    x2 = x.reshape(b * s_len, d)                    # free HBM-level reshape

    kernel = functools.partial(
        _mha_fused_kernel, num_head=num_head, dim_head=dh, rps=rps,
        n_batch=b, scale=scale, eps=1e-5)

    out2 = pl.pallas_call(
        kernel,
        out_shape=jax.ShapeDtypeStruct((b * s_len, d), jnp.float32),
        scratch_shapes=[
            pltpu.VMEM((b * num_head, rps, 3 * d), jnp.float32),    # qkv blocks
            pltpu.VMEM((b * num_head, s_len, 3 * dh), jnp.float32), # q|k|v heads
            pltpu.VMEM((b * num_head, rps, d), jnp.float32),        # ctx blocks
            pltpu.VMEM((b * s_len, d), jnp.float32),                # ctx rows
        ],
        compiler_params=pltpu.CompilerParams(
            vmem_limit_bytes=32 * 1024 * 1024),
    )(x2, w_qkv, b_qkv, w_fc, b_fc, gamma, beta)

    return out2.reshape(b, s_len, d)


# ----------------------------------------------------------------------------
# Pure-JAX reference (mirrors the PyTorch forward, dropout in eval mode)
# ----------------------------------------------------------------------------
def reference_forward(x, params, num_head):
    b, s, d = x.shape
    dim_head = d // num_head
    q = x @ params["w_q"] + params["b_q"]
    k = x @ params["w_k"] + params["b_k"]
    v = x @ params["w_v"] + params["b_v"]
    q = q.reshape(b * num_head, -1, dim_head)
    k = k.reshape(b * num_head, -1, dim_head)
    v = v.reshape(b * num_head, -1, dim_head)
    scale = float(dim_head) ** (-0.5)
    att = jnp.einsum("bqd,bkd->bqk", q, k) * scale
    att = jax.nn.softmax(att, axis=-1)
    ctx = jnp.einsum("bqk,bkd->bqd", att, v)
    ctx = ctx.reshape(b, -1, num_head * dim_head)
    out = ctx @ params["w_fc"] + params["b_fc"]
    out = out + x
    mean = out.mean(-1, keepdims=True)
    var = ((out - mean) ** 2).mean(-1, keepdims=True)
    out = (out - mean) / jnp.sqrt(var + 1e-5)
    return out * params["ln_gamma"] + params["ln_beta"]


if __name__ == "__main__":
    # Small shapes consistent with the module.
    batch, seq_len, dim_model, num_head = 2, 8, 32, 4

    key = jax.random.PRNGKey(0)
    keys = jax.random.split(key, 10)

    def init_linear(kw, kb, d_in, d_out):
        bound = 1.0 / np.sqrt(d_in)
        w = jax.random.uniform(kw, (d_in, d_out), jnp.float32, -bound, bound)
        b_ = jax.random.uniform(kb, (d_out,), jnp.float32, -bound, bound)
        return w, b_

    w_q, b_q = init_linear(keys[0], keys[1], dim_model, dim_model)
    w_k, b_k = init_linear(keys[2], keys[3], dim_model, dim_model)
    w_v, b_v = init_linear(keys[4], keys[5], dim_model, dim_model)
    w_fc, b_fc = init_linear(keys[6], keys[7], dim_model, dim_model)

    params = dict(
        w_q=w_q, b_q=b_q,
        w_k=w_k, b_k=b_k,
        w_v=w_v, b_v=b_v,
        w_fc=w_fc, b_fc=b_fc,
        ln_gamma=jnp.ones((dim_model,), jnp.float32),
        ln_beta=jnp.zeros((dim_model,), jnp.float32),
    )

    x = jax.random.normal(keys[8], (batch, seq_len, dim_model), jnp.float32)

    fwd = jax.jit(lambda xx, pp: multi_head_attention_forward(xx, pp, num_head))
    out = jax.block_until_ready(fwd(x, params))

    ref = reference_forward(x, params, num_head)
    # Exact softmax division restored -> tight tolerance again.
    np.testing.assert_allclose(np.asarray(out), np.asarray(ref),
                               atol=1e-4, rtol=1e-4)

    print("KERNEL_OK")
</pallas_src>

<mosaic_0001>
module attributes {stable_mosaic.version = 11 : i64} {
  func.func @_mha_fused_kernel(%arg0: memref<16x32xf32, #tpu.memory_space<vmem>>, %arg1: memref<32x96xf32, #tpu.memory_space<vmem>>, %arg2: memref<1x96xf32, #tpu.memory_space<vmem>>, %arg3: memref<32x32xf32, #tpu.memory_space<vmem>>, %arg4: memref<1x32xf32, #tpu.memory_space<vmem>>, %arg5: memref<1x32xf32, #tpu.memory_space<vmem>>, %arg6: memref<1x32xf32, #tpu.memory_space<vmem>>, %arg7: memref<16x32xf32, #tpu.memory_space<vmem>>, %arg8: memref<8x2x96xf32, #tpu.memory_space<vmem>>, %arg9: memref<8x8x24xf32, #tpu.memory_space<vmem>>, %arg10: memref<8x2x32xf32, #tpu.memory_space<vmem>>, %arg11: memref<16x32xf32, #tpu.memory_space<vmem>>) attributes {dimension_semantics = [], scalar_prefetch = 0 : i64, scratch_operands = 4 : i64, tpu.core_type = #tpu.core_type<tc>} {
    %c0 = arith.constant 0 : index
    %c0_0 = arith.constant 0 : index
    %0 = vector.load %arg0[%c0, %c0_0] : memref<16x32xf32, #tpu.memory_space<vmem>>, vector<16x32xf32>
    %c0_1 = arith.constant 0 : index
    %c0_2 = arith.constant 0 : index
    %1 = vector.load %arg1[%c0_1, %c0_2] : memref<32x96xf32, #tpu.memory_space<vmem>>, vector<32x96xf32>
    %cst = arith.constant dense<0.000000e+00> : vector<16x96xf32>
    %2 = tpu.matmul %0, %1, %cst {dimension_numbers = #tpu.dot_dimension_numbers<[1], [0], [0], [1], [0, 0, 1, 1], [], []>} : vector<16x32xf32>, vector<32x96xf32>, vector<16x96xf32> -> vector<16x96xf32>
    %c0_3 = arith.constant 0 : index
    %c0_4 = arith.constant 0 : index
    %3 = vector.load %arg2[%c0_3, %c0_4] : memref<1x96xf32, #tpu.memory_space<vmem>>, vector<1x96xf32>
    %4 = vector.broadcast %3 : vector<1x96xf32> to vector<16x96xf32>
    %5 = arith.addf %2, %4 : vector<16x96xf32>
    %6 = vector.extract_strided_slice %5 {offsets = [0, 0], sizes = [2, 96], strides = [1, 1]} : vector<16x96xf32> to vector<2x96xf32>
    %c0_5 = arith.constant 0 : index
    %c0_6 = arith.constant 0 : index
    %c0_7 = arith.constant 0 : index
    %7 = vector.load %arg8[%c0_5, %c0_6, %c0_7] : memref<8x2x96xf32, #tpu.memory_space<vmem>>, vector<1x2x96xf32>
    %8 = vector.shape_cast %7 : vector<1x2x96xf32> to vector<2x96xf32>
    %9 = vector.shape_cast %6 : vector<2x96xf32> to vector<1x2x96xf32>
    tpu.vector_store %arg8[%c0_5, %c0_6, %c0_7], %9 {strides = array<i32>} : memref<8x2x96xf32, #tpu.memory_space<vmem>>, vector<1x2x96xf32>,
    %10 = vector.extract_strided_slice %5 {offsets = [2, 0], sizes = [2, 96], strides = [1, 1]} : vector<16x96xf32> to vector<2x96xf32>
    %c1 = arith.constant 1 : index
    %c0_8 = arith.constant 0 : index
    %c0_9 = arith.constant 0 : index
    %11 = vector.load %arg8[%c1, %c0_8, %c0_9] : memref<8x2x96xf32, #tpu.memory_space<vmem>>, vector<1x2x96xf32>
    %12 = vector.shape_cast %11 : vector<1x2x96xf32> to vector<2x96xf32>
    %13 = vector.shape_cast %10 : vector<2x96xf32> to vector<1x2x96xf32>
    tpu.vector_store %arg8[%c1, %c0_8, %c0_9], %13 {strides = array<i32>} : memref<8x2x96xf32, #tpu.memory_space<vmem>>, vector<1x2x96xf32>,
    %14 = vector.extract_strided_slice %5 {offsets = [4, 0], sizes = [2, 96], strides = [1, 1]} : vector<16x96xf32> to vector<2x96xf32>
    %c2 = arith.constant 2 : index
    %c0_10 = arith.constant 0 : index
    %c0_11 = arith.constant 0 : index
    %15 = vector.load %arg8[%c2, %c0_10, %c0_11] : memref<8x2x96xf32, #tpu.memory_space<vmem>>, vector<1x2x96xf32>
    %16 = vector.shape_cast %15 : vector<1x2x96xf32> to vector<2x96xf32>
    %17 = vector.shape_cast %14 : vector<2x96xf32> to vector<1x2x96xf32>
    tpu.vector_store %arg8[%c2, %c0_10, %c0_11], %17 {strides = array<i32>} : memref<8x2x96xf32, #tpu.memory_space<vmem>>, vector<1x2x96xf32>,
    %18 = vector.extract_strided_slice %5 {offsets = [6, 0], sizes = [2, 96], strides = [1, 1]} : vector<16x96xf32> to vector<2x96xf32>
    %c3 = arith.constant 3 : index
    %c0_12 = arith.constant 0 : index
    %c0_13 = arith.constant 0 : index
    %19 = vector.load %arg8[%c3, %c0_12, %c0_13] : memref<8x2x96xf32, #tpu.memory_space<vmem>>, vector<1x2x96xf32>
    %20 = vector.shape_cast %19 : vector<1x2x96xf32> to vector<2x96xf32>
    %21 = vector.shape_cast %18 : vector<2x96xf32> to vector<1x2x96xf32>
    tpu.vector_store %arg8[%c3, %c0_12, %c0_13], %21 {strides = array<i32>} : memref<8x2x96xf32, #tpu.memory_space<vmem>>, vector<1x2x96xf32>,
    %22 = vector.extract_strided_slice %5 {offsets = [8, 0], sizes = [2, 96], strides = [1, 1]} : vector<16x96xf32> to vector<2x96xf32>
    %c4 = arith.constant 4 : index
    %c0_14 = arith.constant 0 : index
    %c0_15 = arith.constant 0 : index
    %23 = vector.load %arg8[%c4, %c0_14, %c0_15] : memref<8x2x96xf32, #tpu.memory_space<vmem>>, vector<1x2x96xf32>
    %24 = vector.shape_cast %23 : vector<1x2x96xf32> to vector<2x96xf32>
    %25 = vector.shape_cast %22 : vector<2x96xf32> to vector<1x2x96xf32>
    tpu.vector_store %arg8[%c4, %c0_14, %c0_15], %25 {strides = array<i32>} : memref<8x2x96xf32, #tpu.memory_space<vmem>>, vector<1x2x96xf32>,
    %26 = vector.extract_strided_slice %5 {offsets = [10, 0], sizes = [2, 96], strides = [1, 1]} : vector<16x96xf32> to vector<2x96xf32>
    %c5 = arith.constant 5 : index
    %c0_16 = arith.constant 0 : index
    %c0_17 = arith.constant 0 : index
    %27 = vector.load %arg8[%c5, %c0_16, %c0_17] : memref<8x2x96xf32, #tpu.memory_space<vmem>>, vector<1x2x96xf32>
    %28 = vector.shape_cast %27 : vector<1x2x96xf32> to vector<2x96xf32>
    %29 = vector.shape_cast %26 : vector<2x96xf32> to vector<1x2x96xf32>
    tpu.vector_store %arg8[%c5, %c0_16, %c0_17], %29 {strides = array<i32>} : memref<8x2x96xf32, #tpu.memory_space<vmem>>, vector<1x2x96xf32>,
    %30 = vector.extract_strided_slice %5 {offsets = [12, 0], sizes = [2, 96], strides = [1, 1]} : vector<16x96xf32> to vector<2x96xf32>
    %c6 = arith.constant 6 : index
    %c0_18 = arith.constant 0 : index
    %c0_19 = arith.constant 0 : index
    %31 = vector.load %arg8[%c6, %c0_18, %c0_19] : memref<8x2x96xf32, #tpu.memory_space<vmem>>, vector<1x2x96xf32>
    %32 = vector.shape_cast %31 : vector<1x2x96xf32> to vector<2x96xf32>
    %33 = vector.shape_cast %30 : vector<2x96xf32> to vector<1x2x96xf32>
    tpu.vector_store %arg8[%c6, %c0_18, %c0_19], %33 {strides = array<i32>} : memref<8x2x96xf32, #tpu.memory_space<vmem>>, vector<1x2x96xf32>,
    %34 = vector.extract_strided_slice %5 {offsets = [14, 0], sizes = [2, 96], strides = [1, 1]} : vector<16x96xf32> to vector<2x96xf32>
    %c7 = arith.constant 7 : index
    %c0_20 = arith.constant 0 : index
    %c0_21 = arith.constant 0 : index
    %35 = vector.load %arg8[%c7, %c0_20, %c0_21] : memref<8x2x96xf32, #tpu.memory_space<vmem>>, vector<1x2x96xf32>
    %36 = vector.shape_cast %35 : vector<1x2x96xf32> to vector<2x96xf32>
    %37 = vector.shape_cast %34 : vector<2x96xf32> to vector<1x2x96xf32>
    tpu.vector_store %arg8[%c7, %c0_20, %c0_21], %37 {strides = array<i32>} : memref<8x2x96xf32, #tpu.memory_space<vmem>>, vector<1x2x96xf32>,
    %c0_22 = arith.constant 0 : index
    %c0_23 = arith.constant 0 : index
    %c0_24 = arith.constant 0 : index
    %38 = vector.load %arg8[%c0_22, %c0_23, %c0_24] : memref<8x2x96xf32, #tpu.memory_space<vmem>>, vector<8x1x24xf32>
    %c0_25 = arith.constant 0 : index
    %c0_26 = arith.constant 0 : index
    %c0_27 = arith.constant 0 : index
    %39 = vector.load %arg9[%c0_25, %c0_26, %c0_27] : memref<8x8x24xf32, #tpu.memory_space<vmem>>, vector<8x1x24xf32>
    tpu.vector_store %arg9[%c0_25, %c0_26, %c0_27], %38 {strides = array<i32>} : memref<8x8x24xf32, #tpu.memory_space<vmem>>, vector<8x1x24xf32>,
    %c0_28 = arith.constant 0 : index
    %c0_29 = arith.constant 0 : index
    %c24 = arith.constant 24 : index
    %40 = vector.load %arg8[%c0_28, %c0_29, %c24] : memref<8x2x96xf32, #tpu.memory_space<vmem>>, vector<8x1x24xf32>
    %c0_30 = arith.constant 0 : index
    %c1_31 = arith.constant 1 : index
    %c0_32 = arith.constant 0 : index
    %41 = vector.load %arg9[%c0_30, %c1_31, %c0_32] : memref<8x8x24xf32, #tpu.memory_space<vmem>>, vector<8x1x24xf32>
    tpu.vector_store %arg9[%c0_30, %c1_31, %c0_32], %40 {strides = array<i32>} : memref<8x8x24xf32, #tpu.memory_space<vmem>>, vector<8x1x24xf32>,
    %c0_33 = arith.constant 0 : index
    %c0_34 = arith.constant 0 : index
    %c48 = arith.constant 48 : index
    %42 = vector.load %arg8[%c0_33, %c0_34, %c48] : memref<8x2x96xf32, #tpu.memory_space<vmem>>, vector<8x1x24xf32>
    %c0_35 = arith.constant 0 : index
    %c2_36 = arith.constant 2 : index
    %c0_37 = arith.constant 0 : index
    %43 = vector.load %arg9[%c0_35, %c2_36, %c0_37] : memref<8x8x24xf32, #tpu.memory_space<vmem>>, vector<8x1x24xf32>
    tpu.vector_store %arg9[%c0_35, %c2_36, %c0_37], %42 {strides = array<i32>} : memref<8x8x24xf32, #tpu.memory_space<vmem>>, vector<8x1x24xf32>,
    %c0_38 = arith.constant 0 : index
    %c0_39 = arith.constant 0 : index
    %c72 = arith.constant 72 : index
    %44 = vector.load %arg8[%c0_38, %c0_39, %c72] : memref<8x2x96xf32, #tpu.memory_space<vmem>>, vector<8x1x24xf32>
    %c0_40 = arith.constant 0 : index
    %c3_41 = arith.constant 3 : index
    %c0_42 = arith.constant 0 : index
    %45 = vector.load %arg9[%c0_40, %c3_41, %c0_42] : memref<8x8x24xf32, #tpu.memory_space<vmem>>, vector<8x1x24xf32>
    tpu.vector_store %arg9[%c0_40, %c3_41, %c0_42], %44 {strides = array<i32>} : memref<8x8x24xf32, #tpu.memory_space<vmem>>, vector<8x1x24xf32>,
    %c0_43 = arith.constant 0 : index
    %c1_44 = arith.constant 1 : index
    %c0_45 = arith.constant 0 : index
    %46 = vector.load %arg8[%c0_43, %c1_44, %c0_45] : memref<8x2x96xf32, #tpu.memory_space<vmem>>, vector<8x1x24xf32>
    %c0_46 = arith.constant 0 : index
    %c4_47 = arith.constant 4 : index
    %c0_48 = arith.constant 0 : index
    %47 = vector.load %arg9[%c0_46, %c4_47, %c0_48] : memref<8x8x24xf32, #tpu.memory_space<vmem>>, vector<8x1x24xf32>
    tpu.vector_store %arg9[%c0_46, %c4_47, %c0_48], %46 {strides = array<i32>} : memref<8x8x24xf32, #tpu.memory_space<vmem>>, vector<8x1x24xf32>,
    %c0_49 = arith.constant 0 : index
    %c1_50 = arith.constant 1 : index
    %c24_51 = arith.constant 24 : index
    %48 = vector.load %arg8[%c0_49, %c1_50, %c24_51] : memref<8x2x96xf32, #tpu.memory_space<vmem>>, vector<8x1x24xf32>
    %c0_52 = arith.constant 0 : index
    %c5_53 = arith.constant 5 : index
    %c0_54 = arith.constant 0 : index
    %49 = vector.load %arg9[%c0_52, %c5_53, %c0_54] : memref<8x8x24xf32, #tpu.memory_space<vmem>>, vector<8x1x24xf32>
    tpu.vector_store %arg9[%c0_52, %c5_53, %c0_54], %48 {strides = array<i32>} : memref<8x8x24xf32, #tpu.memory_space<vmem>>, vector<8x1x24xf32>,
    %c0_55 = arith.constant 0 : index
    %c1_56 = arith.constant 1 : index
    %c48_57 = arith.constant 48 : index
    %50 = vector.load %arg8[%c0_55, %c1_56, %c48_57] : memref<8x2x96xf32, #tpu.memory_space<vmem>>, vector<8x1x24xf32>
    %c0_58 = arith.constant 0 : index
    %c6_59 = arith.constant 6 : index
    %c0_60 = arith.constant 0 : index
    %51 = vector.load %arg9[%c0_58, %c6_59, %c0_60] : memref<8x8x24xf32, #tpu.memory_space<vmem>>, vector<8x1x24xf32>
    tpu.vector_store %arg9[%c0_58, %c6_59, %c0_60], %50 {strides = array<i32>} : memref<8x8x24xf32, #tpu.memory_space<vmem>>, vector<8x1x24xf32>,
    %c0_61 = arith.constant 0 : index
    %c1_62 = arith.constant 1 : index
    %c72_63 = arith.constant 72 : index
    %52 = vector.load %arg8[%c0_61, %c1_62, %c72_63] : memref<8x2x96xf32, #tpu.memory_space<vmem>>, vector<8x1x24xf32>
    %c0_64 = arith.constant 0 : index
    %c7_65 = arith.constant 7 : index
    %c0_66 = arith.constant 0 : index
    %53 = vector.load %arg9[%c0_64, %c7_65, %c0_66] : memref<8x8x24xf32, #tpu.memory_space<vmem>>, vector<8x1x24xf32>
    tpu.vector_store %arg9[%c0_64, %c7_65, %c0_66], %52 {strides = array<i32>} : memref<8x8x24xf32, #tpu.memory_space<vmem>>, vector<8x1x24xf32>,
    %c0_67 = arith.constant 0 : index
    %c0_68 = arith.constant 0 : index
    %c0_69 = arith.constant 0 : index
    %54 = vector.load %arg9[%c0_67, %c0_68, %c0_69] : memref<8x8x24xf32, #tpu.memory_space<vmem>>, vector<8x8x8xf32>
    %c0_70 = arith.constant 0 : index
    %c0_71 = arith.constant 0 : index
    %c8 = arith.constant 8 : index
    %55 = vector.load %arg9[%c0_70, %c0_71, %c8] : memref<8x8x24xf32, #tpu.memory_space<vmem>>, vector<8x8x8xf32>
    %c0_72 = arith.constant 0 : index
    %c0_73 = arith.constant 0 : index
    %c16 = arith.constant 16 : index
    %56 = vector.load %arg9[%c0_72, %c0_73, %c16] : memref<8x8x24xf32, #tpu.memory_space<vmem>>, vector<8x8x8xf32>
    %cst_74 = arith.constant dense<0.000000e+00> : vector<8x8x8xf32>
    %57 = tpu.matmul %54, %55, %cst_74 {dimension_numbers = #tpu.dot_dimension_numbers<[2], [2], [1], [1], [0, 0, 0, 1, 1, 1], [0], [0]>} : vector<8x8x8xf32>, vector<8x8x8xf32>, vector<8x8x8xf32> -> vector<8x8x8xf32>
    %cst_75 = arith.constant 0.353553385 : f32
    %58 = vector.broadcast %cst_75 : f32 to vector<8x8x8xf32>
    %59 = arith.mulf %57, %58 : vector<8x8x8xf32>
    %cst_76 = arith.constant dense<0xFF800000> : vector<8x8xf32>
    %60 = vector.multi_reduction <maximumf>, %59, %cst_76 [2] : vector<8x8x8xf32> to vector<8x8xf32>
    %61 = vector.shape_cast %60 : vector<8x8xf32> to vector<8x8x1xf32>
    %62 = vector.broadcast %61 : vector<8x8x1xf32> to vector<8x8x8xf32>
    %63 = arith.subf %59, %62 : vector<8x8x8xf32>
    %64 = math.exp %63 : vector<8x8x8xf32>
    %cst_77 = arith.constant dense<0.000000e+00> : vector<8x8xf32>
    %65 = vector.multi_reduction <add>, %64, %cst_77 [2] : vector<8x8x8xf32> to vector<8x8xf32>
    %66 = vector.shape_cast %65 : vector<8x8xf32> to vector<8x8x1xf32>
    %67 = vector.broadcast %66 : vector<8x8x1xf32> to vector<8x8x8xf32>
    %68 = arith.divf %64, %67 : vector<8x8x8xf32>
    %cst_78 = arith.constant dense<0.000000e+00> : vector<8x8x8xf32>
    %69 = tpu.matmul %68, %56, %cst_78 {dimension_numbers = #tpu.dot_dimension_numbers<[2], [1], [1], [2], [0, 0, 0, 1, 1, 2], [0], [0]>} : vector<8x8x8xf32>, vector<8x8x8xf32>, vector<8x8x8xf32> -> vector<8x8x8xf32>
    %70 = vector.extract_strided_slice %69 {offsets = [0, 0, 0], sizes = [8, 1, 8], strides = [1, 1, 1]} : vector<8x8x8xf32> to vector<8x1x8xf32>
    %c0_79 = arith.constant 0 : index
    %c0_80 = arith.constant 0 : index
    %c0_81 = arith.constant 0 : index
    %71 = vector.load %arg10[%c0_79, %c0_80, %c0_81] : memref<8x2x32xf32, #tpu.memory_space<vmem>>, vector<8x1x8xf32>
    tpu.vector_store %arg10[%c0_79, %c0_80, %c0_81], %70 {strides = array<i32>} : memref<8x2x32xf32, #tpu.memory_space<vmem>>, vector<8x1x8xf32>,
    %72 = vector.extract_strided_slice %69 {offsets = [0, 1, 0], sizes = [8, 1, 8], strides = [1, 1, 1]} : vector<8x8x8xf32> to vector<8x1x8xf32>
    %c0_82 = arith.constant 0 : index
    %c0_83 = arith.constant 0 : index
    %c8_84 = arith.constant 8 : index
    %73 = vector.load %arg10[%c0_82, %c0_83, %c8_84] : memref<8x2x32xf32, #tpu.memory_space<vmem>>, vector<8x1x8xf32>
    tpu.vector_store %arg10[%c0_82, %c0_83, %c8_84], %72 {strides = array<i32>} : memref<8x2x32xf32, #tpu.memory_space<vmem>>, vector<8x1x8xf32>,
    %74 = vector.extract_strided_slice %69 {offsets = [0, 2, 0], sizes = [8, 1, 8], strides = [1, 1, 1]} : vector<8x8x8xf32> to vector<8x1x8xf32>
    %c0_85 = arith.constant 0 : index
    %c0_86 = arith.constant 0 : index
    %c16_87 = arith.constant 16 : index
    %75 = vector.load %arg10[%c0_85, %c0_86, %c16_87] : memref<8x2x32xf32, #tpu.memory_space<vmem>>, vector<8x1x8xf32>
    tpu.vector_store %arg10[%c0_85, %c0_86, %c16_87], %74 {strides = array<i32>} : memref<8x2x32xf32, #tpu.memory_space<vmem>>, vector<8x1x8xf32>,
    %76 = vector.extract_strided_slice %69 {offsets = [0, 3, 0], sizes = [8, 1, 8], strides = [1, 1, 1]} : vector<8x8x8xf32> to vector<8x1x8xf32>
    %c0_88 = arith.constant 0 : index
    %c0_89 = arith.constant 0 : index
    %c24_90 = arith.constant 24 : index
    %77 = vector.load %arg10[%c0_88, %c0_89, %c24_90] : memref<8x2x32xf32, #tpu.memory_space<vmem>>, vector<8x1x8xf32>
    tpu.vector_store %arg10[%c0_88, %c0_89, %c24_90], %76 {strides = array<i32>} : memref<8x2x32xf32, #tpu.memory_space<vmem>>, vector<8x1x8xf32>,
    %78 = vector.extract_strided_slice %69 {offsets = [0, 4, 0], sizes = [8, 1, 8], strides = [1, 1, 1]} : vector<8x8x8xf32> to vector<8x1x8xf32>
    %c0_91 = arith.constant 0 : index
    %c1_92 = arith.constant 1 : index
    %c0_93 = arith.constant 0 : index
    %79 = vector.load %arg10[%c0_91, %c1_92, %c0_93] : memref<8x2x32xf32, #tpu.memory_space<vmem>>, vector<8x1x8xf32>
    tpu.vector_store %arg10[%c0_91, %c1_92, %c0_93], %78 {strides = array<i32>} : memref<8x2x32xf32, #tpu.memory_space<vmem>>, vector<8x1x8xf32>,
    %80 = vector.extract_strided_slice %69 {offsets = [0, 5, 0], sizes = [8, 1, 8], strides = [1, 1, 1]} : vector<8x8x8xf32> to vector<8x1x8xf32>
    %c0_94 = arith.constant 0 : index
    %c1_95 = arith.constant 1 : index
    %c8_96 = arith.constant 8 : index
    %81 = vector.load %arg10[%c0_94, %c1_95, %c8_96] : memref<8x2x32xf32, #tpu.memory_space<vmem>>, vector<8x1x8xf32>
    tpu.vector_store %arg10[%c0_94, %c1_95, %c8_96], %80 {strides = array<i32>} : memref<8x2x32xf32, #tpu.memory_space<vmem>>, vector<8x1x8xf32>,
    %82 = vector.extract_strided_slice %69 {offsets = [0, 6, 0], sizes = [8, 1, 8], strides = [1, 1, 1]} : vector<8x8x8xf32> to vector<8x1x8xf32>
    %c0_97 = arith.constant 0 : index
    %c1_98 = arith.constant 1 : index
    %c16_99 = arith.constant 16 : index
    %83 = vector.load %arg10[%c0_97, %c1_98, %c16_99] : memref<8x2x32xf32, #tpu.memory_space<vmem>>, vector<8x1x8xf32>
    tpu.vector_store %arg10[%c0_97, %c1_98, %c16_99], %82 {strides = array<i32>} : memref<8x2x32xf32, #tpu.memory_space<vmem>>, vector<8x1x8xf32>,
    %84 = vector.extract_strided_slice %69 {offsets = [0, 7, 0], sizes = [8, 1, 8], strides = [1, 1, 1]} : vector<8x8x8xf32> to vector<8x1x8xf32>
    %c0_100 = arith.constant 0 : index
    %c1_101 = arith.constant 1 : index
    %c24_102 = arith.constant 24 : index
    %85 = vector.load %arg10[%c0_100, %c1_101, %c24_102] : memref<8x2x32xf32, #tpu.memory_space<vmem>>, vector<8x1x8xf32>
    tpu.vector_store %arg10[%c0_100, %c1_101, %c24_102], %84 {strides = array<i32>} : memref<8x2x32xf32, #tpu.memory_space<vmem>>, vector<8x1x8xf32>,
    %c0_103 = arith.constant 0 : index
    %c0_104 = arith.constant 0 : index
    %c0_105 = arith.constant 0 : index
    %86 = vector.load %arg10[%c0_103, %c0_104, %c0_105] : memref<8x2x32xf32, #tpu.memory_space<vmem>>, vector<1x2x32xf32>
    %87 = vector.shape_cast %86 : vector<1x2x32xf32> to vector<2x32xf32>
    %c0_106 = arith.constant 0 : index
    %c0_107 = arith.constant 0 : index
    %88 = vector.load %arg11[%c0_106, %c0_107] : memref<16x32xf32, #tpu.memory_space<vmem>>, vector<2x32xf32>
    tpu.vector_store %arg11[%c0_106, %c0_107], %87 {strides = array<i32>} : memref<16x32xf32, #tpu.memory_space<vmem>>, vector<2x32xf32>,
    %c1_108 = arith.constant 1 : index
    %c0_109 = arith.constant 0 : index
    %c0_110 = arith.constant 0 : index
    %89 = vector.load %arg10[%c1_108, %c0_109, %c0_110] : memref<8x2x32xf32, #tpu.memory_space<vmem>>, vector<1x2x32xf32>
    %90 = vector.shape_cast %89 : vector<1x2x32xf32> to vector<2x32xf32>
    %c2_111 = arith.constant 2 : index
    %c0_112 = arith.constant 0 : index
    %91 = vector.load %arg11[%c2_111, %c0_112] : memref<16x32xf32, #tpu.memory_space<vmem>>, vector<2x32xf32>
    tpu.vector_store %arg11[%c2_111, %c0_112], %90 {strides = array<i32>} : memref<16x32xf32, #tpu.memory_space<vmem>>, vector<2x32xf32>,
    %c2_113 = arith.constant 2 : index
    %c0_114 = arith.constant 0 : index
    %c0_115 = arith.constant 0 : index
    %92 = vector.load %arg10[%c2_113, %c0_114, %c0_115] : memref<8x2x32xf32, #tpu.memory_space<vmem>>, vector<1x2x32xf32>
    %93 = vector.shape_cast %92 : vector<1x2x32xf32> to vector<2x32xf32>
    %c4_116 = arith.constant 4 : index
    %c0_117 = arith.constant 0 : index
    %94 = vector.load %arg11[%c4_116, %c0_117] : memref<16x32xf32, #tpu.memory_space<vmem>>, vector<2x32xf32>
    tpu.vector_store %arg11[%c4_116, %c0_117], %93 {strides = array<i32>} : memref<16x32xf32, #tpu.memory_space<vmem>>, vector<2x32xf32>,
    %c3_118 = arith.constant 3 : index
    %c0_119 = arith.constant 0 : index
    %c0_120 = arith.constant 0 : index
    %95 = vector.load %arg10[%c3_118, %c0_119, %c0_120] : memref<8x2x32xf32, #tpu.memory_space<vmem>>, vector<1x2x32xf32>
    %96 = vector.shape_cast %95 : vector<1x2x32xf32> to vector<2x32xf32>
    %c6_121 = arith.constant 6 : index
    %c0_122 = arith.constant 0 : index
    %97 = vector.load %arg11[%c6_121, %c0_122] : memref<16x32xf32, #tpu.memory_space<vmem>>, vector<2x32xf32>
    tpu.vector_store %arg11[%c6_121, %c0_122], %96 {strides = array<i32>} : memref<16x32xf32, #tpu.memory_space<vmem>>, vector<2x32xf32>,
    %c4_123 = arith.constant 4 : index
    %c0_124 = arith.constant 0 : index
    %c0_125 = arith.constant 0 : index
    %98 = vector.load %arg10[%c4_123, %c0_124, %c0_125] : memref<8x2x32xf32, #tpu.memory_space<vmem>>, vector<1x2x32xf32>
    %99 = vector.shape_cast %98 : vector<1x2x32xf32> to vector<2x32xf32>
    %c8_126 = arith.constant 8 : index
    %c0_127 = arith.constant 0 : index
    %100 = vector.load %arg11[%c8_126, %c0_127] : memref<16x32xf32, #tpu.memory_space<vmem>>, vector<2x32xf32>
    tpu.vector_store %arg11[%c8_126, %c0_127], %99 {strides = array<i32>} : memref<16x32xf32, #tpu.memory_space<vmem>>, vector<2x32xf32>,
    %c5_128 = arith.constant 5 : index
    %c0_129 = arith.constant 0 : index
    %c0_130 = arith.constant 0 : index
    %101 = vector.load %arg10[%c5_128, %c0_129, %c0_130] : memref<8x2x32xf32, #tpu.memory_space<vmem>>, vector<1x2x32xf32>
    %102 = vector.shape_cast %101 : vector<1x2x32xf32> to vector<2x32xf32>
    %c10 = arith.constant 10 : index
    %c0_131 = arith.constant 0 : index
    %103 = vector.load %arg11[%c10, %c0_131] : memref<16x32xf32, #tpu.memory_space<vmem>>, vector<2x32xf32>
    tpu.vector_store %arg11[%c10, %c0_131], %102 {strides = array<i32>} : memref<16x32xf32, #tpu.memory_space<vmem>>, vector<2x32xf32>,
    %c6_132 = arith.constant 6 : index
    %c0_133 = arith.constant 0 : index
    %c0_134 = arith.constant 0 : index
    %104 = vector.load %arg10[%c6_132, %c0_133, %c0_134] : memref<8x2x32xf32, #tpu.memory_space<vmem>>, vector<1x2x32xf32>
    %105 = vector.shape_cast %104 : vector<1x2x32xf32> to vector<2x32xf32>
    %c12 = arith.constant 12 : index
    %c0_135 = arith.constant 0 : index
    %106 = vector.load %arg11[%c12, %c0_135] : memref<16x32xf32, #tpu.memory_space<vmem>>, vector<2x32xf32>
    tpu.vector_store %arg11[%c12, %c0_135], %105 {strides = array<i32>} : memref<16x32xf32, #tpu.memory_space<vmem>>, vector<2x32xf32>,
    %c7_136 = arith.constant 7 : index
    %c0_137 = arith.constant 0 : index
    %c0_138 = arith.constant 0 : index
    %107 = vector.load %arg10[%c7_136, %c0_137, %c0_138] : memref<8x2x32xf32, #tpu.memory_space<vmem>>, vector<1x2x32xf32>
    %108 = vector.shape_cast %107 : vector<1x2x32xf32> to vector<2x32xf32>
    %c14 = arith.constant 14 : index
    %c0_139 = arith.constant 0 : index
    %109 = vector.load %arg11[%c14, %c0_139] : memref<16x32xf32, #tpu.memory_space<vmem>>, vector<2x32xf32>
    tpu.vector_store %arg11[%c14, %c0_139], %108 {strides = array<i32>} : memref<16x32xf32, #tpu.memory_space<vmem>>, vector<2x32xf32>,
    %c0_140 = arith.constant 0 : index
    %c0_141 = arith.constant 0 : index
    %110 = vector.load %arg11[%c0_140, %c0_141] : memref<16x32xf32, #tpu.memory_space<vmem>>, vector<16x32xf32>
    %c0_142 = arith.constant 0 : index
    %c0_143 = arith.constant 0 : index
    %111 = vector.load %arg3[%c0_142, %c0_143] : memref<32x32xf32, #tpu.memory_space<vmem>>, vector<32x32xf32>
    %cst_144 = arith.constant dense<0.000000e+00> : vector<16x32xf32>
    %112 = tpu.matmul %110, %111, %cst_144 {dimension_numbers = #tpu.dot_dimension_numbers<[1], [0], [0], [1], [0, 0, 1, 1], [], []>} : vector<16x32xf32>, vector<32x32xf32>, vector<16x32xf32> -> vector<16x32xf32>
    %c0_145 = arith.constant 0 : index
    %c0_146 = arith.constant 0 : index
    %113 = vector.load %arg4[%c0_145, %c0_146] : memref<1x32xf32, #tpu.memory_space<vmem>>, vector<1x32xf32>
    %114 = vector.broadcast %113 : vector<1x32xf32> to vector<16x32xf32>
    %115 = arith.addf %112, %114 : vector<16x32xf32>
    %116 = arith.addf %115, %0 : vector<16x32xf32>
    %cst_147 = arith.constant dense<0.000000e+00> : vector<16xf32>
    %117 = vector.multi_reduction <add>, %116, %cst_147 [1] : vector<16x32xf32> to vector<16xf32>
    %118 = vector.shape_cast %117 : vector<16xf32> to vector<16x1xf32>
    %cst_148 = arith.constant 3.200000e+01 : f32
    %119 = vector.broadcast %cst_148 : f32 to vector<16x1xf32>
    %120 = arith.divf %118, %119 : vector<16x1xf32>
    %121 = vector.broadcast %120 : vector<16x1xf32> to vector<16x32xf32>
    %122 = arith.subf %116, %121 : vector<16x32xf32>
    %123 = vector.broadcast %120 : vector<16x1xf32> to vector<16x32xf32>
    %124 = arith.subf %116, %123 : vector<16x32xf32>
    %125 = arith.mulf %122, %124 : vector<16x32xf32>
    %cst_149 = arith.constant dense<0.000000e+00> : vector<16xf32>
    %126 = vector.multi_reduction <add>, %125, %cst_149 [1] : vector<16x32xf32> to vector<16xf32>
    %127 = vector.shape_cast %126 : vector<16xf32> to vector<16x1xf32>
    %cst_150 = arith.constant 3.200000e+01 : f32
    %128 = vector.broadcast %cst_150 : f32 to vector<16x1xf32>
    %129 = arith.divf %127, %128 : vector<16x1xf32>
    %130 = vector.broadcast %120 : vector<16x1xf32> to vector<16x32xf32>
    %131 = arith.subf %116, %130 : vector<16x32xf32>
    %cst_151 = arith.constant 9.99999974E-6 : f32
    %132 = vector.broadcast %cst_151 : f32 to vector<16x1xf32>
    %133 = arith.addf %129, %132 : vector<16x1xf32>
    %134 = math.rsqrt %133 : vector<16x1xf32>
    %135 = vector.broadcast %134 : vector<16x1xf32> to vector<16x32xf32>
    %136 = arith.mulf %131, %135 : vector<16x32xf32>
    %c0_152 = arith.constant 0 : index
    %c0_153 = arith.constant 0 : index
    %137 = vector.load %arg5[%c0_152, %c0_153] : memref<1x32xf32, #tpu.memory_space<vmem>>, vector<1x32xf32>
    %138 = vector.broadcast %137 : vector<1x32xf32> to vector<16x32xf32>
    %139 = arith.mulf %136, %138 : vector<16x32xf32>
    %c0_154 = arith.constant 0 : index
    %c0_155 = arith.constant 0 : index
    %140 = vector.load %arg6[%c0_154, %c0_155] : memref<1x32xf32, #tpu.memory_space<vmem>>, vector<1x32xf32>
    %141 = vector.broadcast %140 : vector<1x32xf32> to vector<16x32xf32>
    %142 = arith.addf %139, %141 : vector<16x32xf32>
    %c0_156 = arith.constant 0 : index
    %c0_157 = arith.constant 0 : index
    %143 = vector.load %arg7[%c0_156, %c0_157] : memref<16x32xf32, #tpu.memory_space<vmem>>, vector<16x32xf32>
    tpu.vector_store %arg7[%c0_156, %c0_157], %142 {strides = array<i32>} : memref<16x32xf32, #tpu.memory_space<vmem>>, vector<16x32xf32>,
    return
  }
}

</mosaic_0001>

<bundles_post_ra>
// kernel: _lambda_.1
= control target key start
LH: loop header
LB: loop body
LE: loop exit
PB: predicated region body
PF: predicated region fallthrough
CT: control target
= control target key end

     0   :  { %vm40_vm0 = vcmask 261120   ;;  %s2858_s0 = inlined_call_operand.vmem [shape: f32[16,32], index: 0, kind: input, shape index: {}]   ;;  %s2859_s1 = inlined_call_operand.vmem [shape: f32[32,96], index: 1, kind: input, shape index: {}]   ;;  %s2860_s2 = inlined_call_operand.vmem [shape: f32[1,96], index: 2, kind: input, shape index: {}]   ;;  %s2861_s3 = inlined_call_operand.vmem [shape: f32[32,32], index: 3, kind: input, shape index: {}]   ;;  %s2862_s4 = inlined_call_operand.vmem [shape: f32[1,32], index: 4, kind: input, shape index: {}]   ;;  %s2863_s5 = inlined_call_operand.vmem [shape: f32[1,32], index: 5, kind: input, shape index: {}]   ;;  %s2864_s6 = inlined_call_operand.vmem [shape: f32[1,32], index: 6, kind: input, shape index: {}]   ;;  %s2865_s7 = inlined_call_operand.hbm [shape: f32[16,32], index: 7, kind: output, shape index: {}]  }
   0x1   :  { %v32_v0 = vld [vmem:[%s2859_s1 + $0x18] sm:$0xff]  ;;  %v31_v1 = vld [vmem:[%s2859_s1 + $0x10] sm:$0xff]  ;;  %v27_v2 = vld [vmem:[%s2858_s0] sm:$0xff] }
   0x2   :  { %2202 = vmatprep.subr.mxu0 %v32_v0  ;;  %v30_v3 = vld [vmem:[%s2859_s1 + $0x8] sm:$0xff]  ;;  %2210 = vmatprep.mubr.msk.f32.mxu0 %vm40_vm0, %v27_v2 }
   0x3   :  { %2203 = vmatpush3.msra.mxu0 %v32_v0 }
   0x4   :  { %12 = vsyncpa [#allocation7], 0  ;;  %2204 = vmatprep.subr.mxu0 %v31_v1  ;;  %v29_v4 = vld [vmem:[%s2859_s1] sm:$0xff]  ;;  %v28_v5 = vld [vmem:[%s2858_s0 + $0x8] sm:$0xff]  ;;  %vm122_vm1 = vcmask 779264   ;;  %vm125_vm2 = vcmask 781314  }
   0x5   :  { %2205 = vmatpush3.msra.mxu0 %v31_v1  ;;  %v2126_v6 = vld [vmem:[%s2860_s2] ss:$0 sm:$0xff]  ;;  %vm128_vm3 = vcmask 783364   ;;  %vm131_vm4 = vcmask 785414   ;;  %s2376_s1 = smov 104   ;;  %s2377_s2 = smov 80  }
   0x6   :  { %2206 = vmatprep.subr.mxu0 %v30_v3  ;;  %s2378_s15 = smov 56   ;;  %vm149_vm5 = vcmask 188416   ;;  %vm2380_vm6 = vmmov 0   ;;  %s2381_s16 = smov 120   ;;  %vm473_vm7 = vcmask 64512   ;;  %vm1791_vm8 = vcmask 57344  }
   0x7   :  { %2207 = vmatpush3.msra.mxu0 %v30_v3  ;;  %s2382_s17 = smov 112   ;;  %vm1907_vm9 = vcmask 61444   ;;  %s2383_s18 = smov 8   ;;  %vm1832_vm10 = vcmask 123969   ;;  %vm1916_vm11 = vcmask 128069   ;;  %vm1865_vm12 = vcmask 190594  }
   0x8   :  { %2208 = vmatprep.subr.mxu0 %v29_v4  ;;  %s2384_s19 = smov 16   ;;  %s2385_s20 = smov 24   ;;  %vm1925_vm13 = vcmask 194694   ;;  %vm1898_vm14 = vcmask 257219   ;;  %vm1934_vm15 = vcmask 261319  }
   0x9   :  { %2209 = vmatpush3.msra.mxu0 %v29_v4  ;;  %s2386_s13 = smov [#allocation6]  }
   0xa   :  { %2211 = vmatmul.mubr.msk.f32.vlgmr.msra.gmra.mxu0 %vm40_vm0, %v28_v5  ;;  %s2115_s14 = sshll.u32 %s2386_s13, 4  ;;  %s2116_s14 = int_to_ptr.vmem [resolvable:$true] %s2115_s14 }
   0xb   :  { %p2359_p1 = scmp.lt.s32.totalorder %s2116_s14, %s2116_s14 }
  0xca   :  { %v2212_v7 = vpop.f32.mrf.mxu0 }
  0xcb   :  { %v119_v8 = vadd.f32 %v2212_v7, %v2126_v6 }
  0xcc   :  { %v113_v9 = vpop.f32.mrf.mxu0 }
  0xcd   :  { %134 = vst.msk [vmem:[#allocation2 + $0x8] sm:$0x3] %vm122_vm1, %v119_v8  ;;  %v114_v10 = vadd.f32 %v2126_v6, %v113_v9  ;;  %v2379_v9 = vmov 0.0  }
  0xce   :  { %136 = vst.msk [vmem:[#allocation2 + $0x8] sm:$0xc] %vm125_vm2, %v119_v8  ;;  %2213 = vmatprep.subr.mxu1 %v2379_v9  ;;  %2233 = vmatprep.subr.mxu0 %v2379_v9 }
  0xcf   :  { %138 = vst.msk [vmem:[#allocation2 + $0x8] sm:$0x30] %vm128_vm3, %v119_v8  ;;  %129 = vst.msk [vmem:[#allocation2] sm:$0x30] %vm128_vm3, %v114_v10  ;;  %2215 = vmatprep.mubr.msk.f32.mxu1 %vm2380_vm6, %v2379_v9  ;;  %2235 = vmatprep.mubr.msk.f32.mxu0 %vm2380_vm6, %v2379_v9 }
  0xd0   :  { %140 = vst.msk [vmem:[#allocation2 + $0x8] sm:$0xc0] %vm131_vm4, %v119_v8  ;;  %132 = vst.msk [vmem:[#allocation2] sm:$0xc0] %vm131_vm4, %v114_v10 }
  0xd1   :  { %123 = vst.msk [vmem:[#allocation2] sm:$0x3] %vm122_vm1, %v114_v10  ;;  %vm1944_vm1 = vcmask 254976  }
  0xd2   :  { %126 = vst.msk [vmem:[#allocation2] sm:$0xc] %vm125_vm2, %v114_v10 }
  0xd4   :  { %v162_v12 = vld [vmem:[#allocation2 + $0x8] sm:$0x1]  ;;  %v322_v18 = vld [vmem:[#allocation2 + $0x9] sm:$0x1] }
  0xd5   :  { %v163_v11 = vld [vmem:[#allocation2 + $0xa] sm:$0x1]  ;;  %182 = vrot.lane.b32.xlu0 %v162_v12, %s2376_s1  ;;  %v210_v14 = vld [vmem:[#allocation2 + $0x8] sm:$0x1]  ;;  %v323_v17 = vld [vmem:[#allocation2 + $0xb] sm:$0x1] }
  0xd6   :  { %184 = vrot.lane.b32.xlu1 %v163_v11, %s2376_s1  ;;  %v211_v13 = vld [vmem:[#allocation2 + $0xa] sm:$0x1]  ;;  %v258_v16 = vld [vmem:[#allocation2 + $0x8] sm:$0x1]  ;;  %v371_v19 = vld [vmem:[#allocation2 + $0xb] sm:$0x1] }
  0xd7   :  { %v259_v15 = vld [vmem:[#allocation2 + $0xa] sm:$0x1]  ;;  %v370_v20 = vld [vmem:[#allocation2 + $0x9] sm:$0x1]  ;;  %v143_v25 = vld [vmem:[#allocation2 + $0x4] sm:$0x1] }
  0xd8   :  { %v141_v21 = vld [vmem:[#allocation2] sm:$0x1]  ;;  %v302_v22 = vld [vmem:[#allocation2 + $0x1] sm:$0x1]  ;;  %v304_v26 = vld [vmem:[#allocation2 + $0x5] sm:$0x1] }
  0xd9   :  { %230 = vrot.lane.b32.xlu0 %v210_v14, %s2377_s2  ;;  %v142_v23 = vld [vmem:[#allocation2 + $0x2] sm:$0x1]  ;;  %150 = vst.msk [vmem:[#allocation3] sm:$0x1] %vm149_vm5, %v141_v21  ;;  %310 = vst.msk [vmem:[#allocation3 + $0x4] sm:$0x1] %vm149_vm5, %v302_v22 }
  0xda   :  { %232 = vrot.lane.b32.xlu1 %v211_v13, %s2377_s2  ;;  %151 = vst.msk [vmem:[#allocation3 + $0x8] sm:$0x1] %vm149_vm5, %v142_v23  ;;  %v303_v24 = vld [vmem:[#allocation2 + $0x3] sm:$0x1]  ;;  %v419_v27 = vld [vmem:[#allocation2 + $0xb] sm:$0x1] }
  0xdb   :  { %v418_v28 = vld [vmem:[#allocation2 + $0x9] sm:$0x1]  ;;  %311 = vst.msk [vmem:[#allocation3 + $0xc] sm:$0x1] %vm149_vm5, %v303_v24  ;;  %152 = vst.msk [vmem:[#allocation3 + $0x10] sm:$0x1] %vm149_vm5, %v143_v25 }
  0xdc   :  { %312 = vst.msk [vmem:[#allocation3 + $0x14] sm:$0x1] %vm149_vm5, %v304_v26  ;;  %v145_v29 = vld [vmem:[#allocation2 + $0x8] sm:$0x1]  ;;  %v306_v30 = vld [vmem:[#allocation2 + $0x9] sm:$0x1] }
  0xdd   :  { %278 = vrot.lane.b32.xlu0 %v258_v16, %s2378_s15  ;;  %v144_v31 = vld [vmem:[#allocation2 + $0x6] sm:$0x1]  ;;  %154 = vst.msk [vmem:[#allocation3 + $0x20] sm:$0x1] %vm149_vm5, %v145_v29  ;;  %314 = vst.msk [vmem:[#allocation3 + $0x24] sm:$0x1] %vm149_vm5, %v306_v30 }
  0xde   :  { %280 = vrot.lane.b32.xlu1 %v259_v15, %s2378_s15  ;;  %153 = vst.msk [vmem:[#allocation3 + $0x18] sm:$0x1] %vm149_vm5, %v144_v31  ;;  %v305_v32 = vld [vmem:[#allocation2 + $0x7] sm:$0x1]  ;;  %v146_v33 = vld [vmem:[#allocation2 + $0xa] sm:$0x1] }
  0xdf   :  { %v307_v34 = vld [vmem:[#allocation2 + $0xb] sm:$0x1]  ;;  %313 = vst.msk [vmem:[#allocation3 + $0x1c] sm:$0x1] %vm149_vm5, %v305_v32  ;;  %155 = vst.msk [vmem:[#allocation3 + $0x28] sm:$0x1] %vm149_vm5, %v146_v33 }
  0xe0   :  { %315 = vst.msk [vmem:[#allocation3 + $0x2c] sm:$0x1] %vm149_vm5, %v307_v34  ;;  %v148_v35 = vld [vmem:[#allocation2 + $0xe] sm:$0x1]  ;;  %v309_v36 = vld [vmem:[#allocation2 + $0xf] sm:$0x1] }
  0xe1   :  { %342 = vrot.lane.b32.xlu0 %v322_v18, %s2376_s1  ;;  %v147_v37 = vld [vmem:[#allocation2 + $0xc] sm:$0x1]  ;;  %157 = vst.msk [vmem:[#allocation3 + $0x38] sm:$0x1] %vm149_vm5, %v148_v35  ;;  %317 = vst.msk [vmem:[#allocation3 + $0x3c] sm:$0x1] %vm149_vm5, %v309_v36 }
  0xe2   :  { %344 = vrot.lane.b32.xlu1 %v323_v17, %s2376_s1  ;;  %156 = vst.msk [vmem:[#allocation3 + $0x30] sm:$0x1] %vm149_vm5, %v147_v37  ;;  %v308_v38 = vld [vmem:[#allocation2 + $0xd] sm:$0x1]  ;;  %v165_v39 = vld [vmem:[#allocation2 + $0xe] sm:$0x1] }
  0xe3   :  { %316 = vst.msk [vmem:[#allocation3 + $0x34] sm:$0x1] %vm149_vm5, %v308_v38  ;;  %v164_v40 = vld [vmem:[#allocation2 + $0xc] sm:$0x1]  ;;  %v213_v41 = vld [vmem:[#allocation2 + $0xe] sm:$0x1] }
  0xe4   :  { %v212_v42 = vld [vmem:[#allocation2 + $0xc] sm:$0x1]  ;;  %v261_v43 = vld [vmem:[#allocation2 + $0xe] sm:$0x1]  ;;  %v325_v45 = vld [vmem:[#allocation2 + $0xf] sm:$0x1] }
  0xe5   :  { %390 = vrot.lane.b32.xlu0 %v370_v20, %s2377_s2  ;;  %v260_v44 = vld [vmem:[#allocation2 + $0xc] sm:$0x1]  ;;  %v324_v46 = vld [vmem:[#allocation2 + $0xd] sm:$0x1]  ;;  %v254_v47 = vld [vmem:[#allocation2] sm:$0x1] }
  0xe6   :  { %392 = vrot.lane.b32.xlu1 %v371_v19, %s2377_s2  ;;  %v158_v48 = vld [vmem:[#allocation2] sm:$0x1]  ;;  %v318_v49 = vld [vmem:[#allocation2 + $0x1] sm:$0x1]  ;;  %v207_v53 = vld [vmem:[#allocation2 + $0x2] sm:$0x1] }
  0xe7   :  { %v206_v50 = vld [vmem:[#allocation2] sm:$0x1]  ;;  %v414_v51 = vld [vmem:[#allocation2 + $0x1] sm:$0x1]  ;;  %v159_v54 = vld [vmem:[#allocation2 + $0x2] sm:$0x1] }
  0xe8   :  { %v366_v52 = vld [vmem:[#allocation2 + $0x1] sm:$0x1]  ;;  %v319_v55 = vld [vmem:[#allocation2 + $0x3] sm:$0x1]  ;;  %v255_v56 = vld [vmem:[#allocation2 + $0x2] sm:$0x1] }
  0xe9   :  { %438 = vrot.lane.b32.xlu0 %v418_v28, %s2378_s15  ;;  %v415_v57 = vld [vmem:[#allocation2 + $0x3] sm:$0x1]  ;;  %v208_v59 = vld [vmem:[#allocation2 + $0x4] sm:$0x1]  ;;  %v320_v61 = vld [vmem:[#allocation2 + $0x5] sm:$0x1] }
  0xea   :  { %440 = vrot.lane.b32.xlu1 %v419_v27, %s2378_s15  ;;  %v367_v58 = vld [vmem:[#allocation2 + $0x3] sm:$0x1]  ;;  %v160_v60 = vld [vmem:[#allocation2 + $0x4] sm:$0x1]  ;;  %v416_v63 = vld [vmem:[#allocation2 + $0x5] sm:$0x1] }
  0xeb   :  { %v256_v62 = vld [vmem:[#allocation2 + $0x4] sm:$0x1]  ;;  %v368_v0 = vld [vmem:[#allocation2 + $0x5] sm:$0x1]  ;;  %v209_v1 = vld [vmem:[#allocation2 + $0x6] sm:$0x1] }
  0xec   :  { %v161_v2 = vld [vmem:[#allocation2 + $0x6] sm:$0x1]  ;;  %v321_v3 = vld [vmem:[#allocation2 + $0x7] sm:$0x1]  ;;  %v373_v7 = vld [vmem:[#allocation2 + $0xf] sm:$0x1] }
  0xed   :  { %186 = vrot.lane.b32.xlu0 %v164_v40, %s2376_s1  ;;  %v257_v4 = vld [vmem:[#allocation2 + $0x6] sm:$0x1]  ;;  %v417_v5 = vld [vmem:[#allocation2 + $0x7] sm:$0x1]  ;;  %v372_v8 = vld [vmem:[#allocation2 + $0xd] sm:$0x1] }
  0xee   :  { %188 = vrot.lane.b32.xlu1 %v165_v39, %s2376_s1  ;;  %v369_v6 = vld [vmem:[#allocation2 + $0x7] sm:$0x1]  ;;  %v421_v10 = vld [vmem:[#allocation2 + $0xf] sm:$0x1]  ;;  %v420_v11 = vld [vmem:[#allocation2 + $0xd] sm:$0x1] }
  0xf1   :  { %234 = vrot.lane.b32.xlu0 %v212_v42, %s2377_s2 }
  0xf2   :  { %236 = vrot.lane.b32.xlu1 %v213_v41, %s2377_s2 }
  0xf5   :  { %282 = vrot.lane.b32.xlu0 %v260_v44, %s2378_s15 }
  0xf6   :  { %284 = vrot.lane.b32.xlu1 %v261_v43, %s2378_s15 }
  0xf9   :  { %346 = vrot.lane.b32.xlu0 %v324_v46, %s2376_s1 }
  0xfa   :  { %348 = vrot.lane.b32.xlu1 %v325_v45, %s2376_s1 }
  0xfd   :  { %174 = vrot.lane.b32.xlu0 %v158_v48, %s2376_s1 }
  0xfe   :  { %270 = vrot.lane.b32.xlu1 %v254_v47, %s2378_s15 }
 0x101   :  { %222 = vrot.lane.b32.xlu0 %v206_v50, %s2377_s2 }
 0x102   :  { %334 = vrot.lane.b32.xlu1 %v318_v49, %s2376_s1 }
 0x105   :  { %382 = vrot.lane.b32.xlu0 %v366_v52, %s2377_s2 }
 0x106   :  { %430 = vrot.lane.b32.xlu1 %v414_v51, %s2378_s15 }
 0x109   :  { %176 = vrot.lane.b32.xlu0 %v159_v54, %s2376_s1 }
 0x10a   :  { %224 = vrot.lane.b32.xlu1 %v207_v53, %s2377_s2 }
 0x10d   :  { %272 = vrot.lane.b32.xlu0 %v255_v56, %s2378_s15 }
 0x10e   :  { %336 = vrot.lane.b32.xlu1 %v319_v55, %s2376_s1 }
 0x111   :  { %384 = vrot.lane.b32.xlu0 %v367_v58, %s2377_s2 }
 0x112   :  { %432 = vrot.lane.b32.xlu1 %v415_v57, %s2378_s15 }
 0x115   :  { %178 = vrot.lane.b32.xlu0 %v160_v60, %s2376_s1 }
 0x116   :  { %226 = vrot.lane.b32.xlu1 %v208_v59, %s2377_s2 }
 0x119   :  { %274 = vrot.lane.b32.xlu0 %v256_v62, %s2378_s15 }
 0x11a   :  { %338 = vrot.lane.b32.xlu1 %v320_v61, %s2376_s1 }
 0x11d   :  { %386 = vrot.lane.b32.xlu0 %v368_v0, %s2377_s2 }
 0x11e   :  { %434 = vrot.lane.b32.xlu1 %v416_v63, %s2378_s15 }
 0x121   :  { %180 = vrot.lane.b32.xlu0 %v161_v2, %s2376_s1 }
 0x122   :  { %228 = vrot.lane.b32.xlu1 %v209_v1, %s2377_s2 }
 0x125   :  { %276 = vrot.lane.b32.xlu0 %v257_v4, %s2378_s15 }
 0x126   :  { %340 = vrot.lane.b32.xlu1 %v321_v3, %s2376_s1  ;;  %s2354_s1 = scalar_lea.vmem %s2116_s14, 256 }
 0x127   :  { %p2355_p0 = scmp.ne.s32.totalorder %s2116_s14, %s2354_s1  ;;  %p2360_p2 = scmp.lt.s32.totalorder %s2354_s1, %s2354_s1 }
 0x129   :  { %388 = vrot.lane.b32.xlu0 %v369_v6, %s2377_s2  ;;  %p2361_p3 = por %p2360_p2, %p2359_p1 }
 0x12a   :  { %436 = vrot.lane.b32.xlu1 %v417_v5, %s2378_s15 }
 0x12b   :  { %p2362_p4 = pnand %p2361_p3, %p2355_p0 }
 0x12d   :  { %394 = vrot.lane.b32.xlu0 %v372_v8, %s2377_s2 }
 0x12e   :  { %396 = vrot.lane.b32.xlu1 %v373_v7, %s2377_s2 }
 0x131   :  { %442 = vrot.lane.b32.xlu0 %v420_v11, %s2378_s15 }
 0x132   :  { %444 = vrot.lane.b32.xlu1 %v421_v10, %s2378_s15 }
 0x147   :  { %v183_v13 = vpop.permute.xlu0 %182 }
 0x148   :  { %v185_v12 = vpop.permute.xlu1 %184  ;;  %202 = vst.msk [vmem:[#allocation3 + $0x21] sm:$0x1] %vm149_vm5, %v183_v13 }
 0x149   :  { %203 = vst.msk [vmem:[#allocation3 + $0x29] sm:$0x1] %vm149_vm5, %v185_v12 }
 0x14b   :  { %v231_v15 = vpop.permute.xlu0 %230 }
 0x14c   :  { %v233_v14 = vpop.permute.xlu1 %232  ;;  %250 = vst.msk [vmem:[#allocation3 + $0x22] sm:$0x1] %vm149_vm5, %v231_v15 }
 0x14d   :  { %251 = vst.msk [vmem:[#allocation3 + $0x2a] sm:$0x1] %vm149_vm5, %v233_v14 }
 0x14f   :  { %v279_v17 = vpop.permute.xlu0 %278 }
 0x150   :  { %v281_v16 = vpop.permute.xlu1 %280  ;;  %298 = vst.msk [vmem:[#allocation3 + $0x23] sm:$0x1] %vm149_vm5, %v279_v17 }
 0x151   :  { %299 = vst.msk [vmem:[#allocation3 + $0x2b] sm:$0x1] %vm149_vm5, %v281_v16 }
 0x153   :  { %v343_v19 = vpop.permute.xlu0 %342 }
 0x154   :  { %v345_v18 = vpop.permute.xlu1 %344  ;;  %362 = vst.msk [vmem:[#allocation3 + $0x25] sm:$0x1] %vm149_vm5, %v343_v19 }
 0x155   :  { %363 = vst.msk [vmem:[#allocation3 + $0x2d] sm:$0x1] %vm149_vm5, %v345_v18 }
 0x157   :  { %v391_v21 = vpop.permute.xlu0 %390 }
 0x158   :  { %v393_v20 = vpop.permute.xlu1 %392  ;;  %410 = vst.msk [vmem:[#allocation3 + $0x26] sm:$0x1] %vm149_vm5, %v391_v21 }
 0x159   :  { %411 = vst.msk [vmem:[#allocation3 + $0x2e] sm:$0x1] %vm149_vm5, %v393_v20 }
 0x15b   :  { %v439_v23 = vpop.permute.xlu0 %438 }
 0x15c   :  { %v441_v22 = vpop.permute.xlu1 %440  ;;  %458 = vst.msk [vmem:[#allocation3 + $0x27] sm:$0x1] %vm149_vm5, %v439_v23 }
 0x15d   :  { %459 = vst.msk [vmem:[#allocation3 + $0x2f] sm:$0x1] %vm149_vm5, %v441_v22 }
 0x15f   :  { %v187_v25 = vpop.permute.xlu0 %186 }
 0x160   :  { %v189_v24 = vpop.permute.xlu1 %188  ;;  %204 = vst.msk [vmem:[#allocation3 + $0x31] sm:$0x1] %vm149_vm5, %v187_v25 }
 0x161   :  { %205 = vst.msk [vmem:[#allocation3 + $0x39] sm:$0x1] %vm149_vm5, %v189_v24 }
 0x163   :  { %v235_v27 = vpop.permute.xlu0 %234  ;;  %v2575_v59 = vld [vmem:[#allocation3 + $0x20] sm:$0xff] }
 0x164   :  { %v237_v26 = vpop.permute.xlu1 %236  ;;  %252 = vst.msk [vmem:[#allocation3 + $0x32] sm:$0x1] %vm149_vm5, %v235_v27  ;;  %v2589_v1 = vld [vmem:[#allocation3 + $0x28] sm:$0xff] }
 0x165   :  { %253 = vst.msk [vmem:[#allocation3 + $0x3a] sm:$0x1] %vm149_vm5, %v237_v26 }
 0x167   :  { %v283_v29 = vpop.permute.xlu0 %282 }
 0x168   :  { %v285_v28 = vpop.permute.xlu1 %284  ;;  %300 = vst.msk [vmem:[#allocation3 + $0x33] sm:$0x1] %vm149_vm5, %v283_v29 }
 0x169   :  { %301 = vst.msk [vmem:[#allocation3 + $0x3b] sm:$0x1] %vm149_vm5, %v285_v28 }
 0x16b   :  { %v347_v31 = vpop.permute.xlu0 %346 }
 0x16c   :  { %v349_v30 = vpop.permute.xlu1 %348  ;;  %364 = vst.msk [vmem:[#allocation3 + $0x35] sm:$0x1] %vm149_vm5, %v347_v31 }
 0x16d   :  { %365 = vst.msk [vmem:[#allocation3 + $0x3d] sm:$0x1] %vm149_vm5, %v349_v30 }
 0x16f   :  { %v175_v33 = vpop.permute.xlu0 %174 }
 0x170   :  { %v271_v32 = vpop.permute.xlu1 %270  ;;  %198 = vst.msk [vmem:[#allocation3 + $0x1] sm:$0x1] %vm149_vm5, %v175_v33 }
 0x171   :  { %294 = vst.msk [vmem:[#allocation3 + $0x3] sm:$0x1] %vm149_vm5, %v271_v32 }
 0x173   :  { %v223_v35 = vpop.permute.xlu0 %222 }
 0x174   :  { %v335_v34 = vpop.permute.xlu1 %334  ;;  %246 = vst.msk [vmem:[#allocation3 + $0x2] sm:$0x1] %vm149_vm5, %v223_v35 }
 0x175   :  { %358 = vst.msk [vmem:[#allocation3 + $0x5] sm:$0x1] %vm149_vm5, %v335_v34 }
 0x177   :  { %v383_v37 = vpop.permute.xlu0 %382 }
 0x178   :  { %v431_v36 = vpop.permute.xlu1 %430  ;;  %406 = vst.msk [vmem:[#allocation3 + $0x6] sm:$0x1] %vm149_vm5, %v383_v37 }
 0x179   :  { %454 = vst.msk [vmem:[#allocation3 + $0x7] sm:$0x1] %vm149_vm5, %v431_v36 }
 0x17b   :  { %v177_v39 = vpop.permute.xlu0 %176 }
 0x17c   :  { %v225_v38 = vpop.permute.xlu1 %224  ;;  %199 = vst.msk [vmem:[#allocation3 + $0x9] sm:$0x1] %vm149_vm5, %v177_v39 }
 0x17d   :  { %247 = vst.msk [vmem:[#allocation3 + $0xa] sm:$0x1] %vm149_vm5, %v225_v38 }
 0x17f   :  { %v273_v41 = vpop.permute.xlu0 %272 }
 0x180   :  { %v337_v40 = vpop.permute.xlu1 %336  ;;  %v2549_v42 = vld [vmem:[#allocation3] sm:$0xff]  ;;  %295 = vst.msk [vmem:[#allocation3 + $0xb] sm:$0x1] %vm149_vm5, %v273_v41 }
 0x181   :  { %359 = vst.msk [vmem:[#allocation3 + $0xd] sm:$0x1] %vm149_vm5, %v337_v40  ;;  %471 = vrot.lane.b32.xlu0 %v2549_v42, %s2381_s16 }
 0x183   :  { %v385_v44 = vpop.permute.xlu0 %384 }
 0x184   :  { %v433_v43 = vpop.permute.xlu1 %432  ;;  %407 = vst.msk [vmem:[#allocation3 + $0xe] sm:$0x1] %vm149_vm5, %v385_v44 }
 0x185   :  { %455 = vst.msk [vmem:[#allocation3 + $0xf] sm:$0x1] %vm149_vm5, %v433_v43 }
 0x187   :  { %v179_v46 = vpop.permute.xlu0 %178 }
 0x188   :  { %v227_v45 = vpop.permute.xlu1 %226  ;;  %200 = vst.msk [vmem:[#allocation3 + $0x11] sm:$0x1] %vm149_vm5, %v179_v46 }
 0x189   :  { %248 = vst.msk [vmem:[#allocation3 + $0x12] sm:$0x1] %vm149_vm5, %v227_v45 }
 0x18b   :  { %v275_v48 = vpop.permute.xlu0 %274 }
 0x18c   :  { %v339_v47 = vpop.permute.xlu1 %338  ;;  %v2559_v49 = vld [vmem:[#allocation3 + $0x8] sm:$0xff]  ;;  %296 = vst.msk [vmem:[#allocation3 + $0x13] sm:$0x1] %vm149_vm5, %v275_v48 }
 0x18d   :  { %360 = vst.msk [vmem:[#allocation3 + $0x15] sm:$0x1] %vm149_vm5, %v339_v47  ;;  %549 = vrot.lane.b32.xlu1 %v2559_v49, %s2381_s16 }
 0x18f   :  { %v387_v51 = vpop.permute.xlu0 %386 }
 0x190   :  { %v435_v50 = vpop.permute.xlu1 %434  ;;  %408 = vst.msk [vmem:[#allocation3 + $0x16] sm:$0x1] %vm149_vm5, %v387_v51 }
 0x191   :  { %456 = vst.msk [vmem:[#allocation3 + $0x17] sm:$0x1] %vm149_vm5, %v435_v50 }
 0x193   :  { %v181_v53 = vpop.permute.xlu0 %180 }
 0x194   :  { %v229_v52 = vpop.permute.xlu1 %228  ;;  %201 = vst.msk [vmem:[#allocation3 + $0x19] sm:$0x1] %vm149_vm5, %v181_v53 }
 0x195   :  { %249 = vst.msk [vmem:[#allocation3 + $0x1a] sm:$0x1] %vm149_vm5, %v229_v52 }
 0x197   :  { %v277_v55 = vpop.permute.xlu0 %276 }
 0x198   :  { %v341_v54 = vpop.permute.xlu1 %340  ;;  %v2569_v56 = vld [vmem:[#allocation3 + $0x10] sm:$0xff]  ;;  %297 = vst.msk [vmem:[#allocation3 + $0x1b] sm:$0x1] %vm149_vm5, %v277_v55 }
 0x199   :  { %361 = vst.msk [vmem:[#allocation3 + $0x1d] sm:$0x1] %vm149_vm5, %v341_v54  ;;  %626 = vrot.lane.b32.xlu0 %v2569_v56, %s2381_s16 }
 0x19b   :  { %v389_v58 = vpop.permute.xlu0 %388 }
 0x19c   :  { %v437_v57 = vpop.permute.xlu1 %436  ;;  %409 = vst.msk [vmem:[#allocation3 + $0x1e] sm:$0x1] %vm149_vm5, %v389_v58 }
 0x19d   :  { %457 = vst.msk [vmem:[#allocation3 + $0x1f] sm:$0x1] %vm149_vm5, %v437_v57  ;;  %780 = vrot.lane.b32.xlu0 %v2575_v59, %s2381_s16 }
 0x19f   :  { %v395_v61 = vpop.permute.xlu0 %394 }
 0x1a0   :  { %v397_v60 = vpop.permute.xlu1 %396  ;;  %412 = vst.msk [vmem:[#allocation3 + $0x36] sm:$0x1] %vm149_vm5, %v395_v61 }
 0x1a1   :  { %413 = vst.msk [vmem:[#allocation3 + $0x3e] sm:$0x1] %vm149_vm5, %v397_v60 }
 0x1a3   :  { %v443_v63 = vpop.permute.xlu0 %442 }
 0x1a4   :  { %v445_v62 = vpop.permute.xlu1 %444  ;;  %v2583_v0 = vld [vmem:[#allocation3 + $0x18] sm:$0xff]  ;;  %460 = vst.msk [vmem:[#allocation3 + $0x37] sm:$0x1] %vm149_vm5, %v443_v63 }
 0x1a5   :  { %461 = vst.msk [vmem:[#allocation3 + $0x3f] sm:$0x1] %vm149_vm5, %v445_v62  ;;  %703 = vrot.lane.b32.xlu1 %v2583_v0, %s2381_s16 }
 0x1a9   :  { %857 = vrot.lane.b32.xlu1 %v2589_v1, %s2381_s16 }
 0x1ab   :  { %v2595_v3 = vld [vmem:[#allocation3 + $0x30] sm:$0xff] }
 0x1ac   :  { %v2593_v2 = vld [vmem:[#allocation3 + $0x38] sm:$0xff]  ;;  %934 = vrot.lane.b32.xlu0 %v2595_v3, %s2381_s16 }
 0x1ad   :  { %1011 = vrot.lane.b32.xlu1 %v2593_v2, %s2381_s16 }
 0x1f3   :  { %v472_v4 = vpop.permute.xlu0 %471 }
 0x1f4   :  { %2214 = vmatpush3.xpose.msk.msra.mxu1 %vm473_vm7, %v472_v4 }
 0x1f5   :  { %2218 = vmatprep.subr.mxu1 %v2379_v9 }
 0x1f7   :  { %2216 = vmatmul.mubr.msk.f32.vlgmr.msra.gmra.mxu1 %vm473_vm7, %v2549_v42 }
 0x1f8   :  { %2220 = vmatprep.mubr.msk.f32.mxu1 %vm2380_vm6, %v2379_v9 }
 0x1ff   :  { %v550_v5 = vpop.permute.xlu1 %549 }
 0x200   :  { %2219 = vmatpush3.xpose.msk.msra.mxu1 %vm473_vm7, %v550_v5 }
 0x201   :  { %2223 = vmatprep.subr.mxu1 %v2379_v9 }
 0x203   :  { %2221 = vmatmul.mubr.msk.f32.vlgmr.msra.gmra.mxu1 %vm473_vm7, %v2559_v49 }
 0x204   :  { %2225 = vmatprep.mubr.msk.f32.mxu1 %vm2380_vm6, %v2379_v9 }
 0x20b   :  { %v627_v6 = vpop.permute.xlu0 %626 }
 0x20c   :  { %2224 = vmatpush3.xpose.msk.msra.mxu1 %vm473_vm7, %v627_v6 }
 0x20d   :  { %2228 = vmatprep.subr.mxu1 %v2379_v9 }
 0x20f   :  { %2226 = vmatmul.mubr.msk.f32.vlgmr.msra.gmra.mxu1 %vm473_vm7, %v2569_v56  ;;  %v781_v7 = vpop.permute.xlu0 %780 }
 0x210   :  { %2234 = vmatpush3.xpose.msk.msra.mxu0 %vm473_vm7, %v781_v7  ;;  %2230 = vmatprep.mubr.msk.f32.mxu1 %vm2380_vm6, %v2379_v9 }
 0x211   :  { %2243 = vmatprep.subr.mxu0 %v2379_v9 }
 0x213   :  { %2236 = vmatmul.mubr.msk.f32.vlgmr.msra.gmra.mxu0 %vm473_vm7, %v2575_v59 }
 0x214   :  { %2245 = vmatprep.mubr.msk.f32.mxu0 %vm2380_vm6, %v2379_v9 }
 0x217   :  { %v704_v8 = vpop.permute.xlu1 %703 }
 0x218   :  { %2229 = vmatpush3.xpose.msk.msra.mxu1 %vm473_vm7, %v704_v8 }
 0x219   :  { %2238 = vmatprep.subr.mxu1 %v2379_v9 }
 0x21b   :  { %v858_v10 = vpop.permute.xlu1 %857  ;;  %2231 = vmatmul.mubr.msk.f32.vlgmr.msra.gmra.mxu1 %vm473_vm7, %v2583_v0 }
 0x21c   :  { %2239 = vmatpush3.xpose.msk.msra.mxu1 %vm473_vm7, %v858_v10  ;;  %2240 = vmatprep.mubr.msk.f32.mxu1 %vm2380_vm6, %v2379_v9 }
 0x21d   :  { %2248 = vmatprep.subr.mxu1 %v2379_v9 }
 0x21e   :  { %v935_v12 = vpop.permute.xlu0 %934 }
 0x21f   :  { %v1012_v11 = vpop.permute.xlu1 %1011  ;;  %2241 = vmatmul.mubr.msk.f32.vlgmr.msra.gmra.mxu1 %vm473_vm7, %v2589_v1  ;;  %2244 = vmatpush3.xpose.msk.msra.mxu0 %vm473_vm7, %v935_v12 }
 0x220   :  { %2249 = vmatpush3.xpose.msk.msra.mxu1 %vm473_vm7, %v1012_v11  ;;  %2250 = vmatprep.mubr.msk.f32.mxu1 %vm2380_vm6, %v2379_v9 }
 0x221   :  { %2253 = vmatprep.subr.mxu0 %v2379_v9  ;;  %2258 = vmatprep.subr.mxu1 %v2379_v9 }
 0x222   :  { %2246 = vmatmul.mubr.msk.f32.vlgmr.msra.gmra.mxu0 %vm473_vm7, %v2595_v3 }
 0x223   :  { %2251 = vmatmul.mubr.msk.f32.vlgmr.msra.gmra.mxu1 %vm473_vm7, %v2593_v2  ;;  %2255 = vmatprep.mubr.msk.f32.mxu0 %vm2380_vm6, %v2379_v9 }
 0x224   :  { %2260 = vmatprep.mubr.msk.f32.mxu1 %vm2380_vm6, %v2379_v9 }
 0x2b7   :  { %v544_v13 = vpop.f32.mrf.mxu1 }
 0x2b8   :  { %v1087_v14 = vmul.f32 0.35355338, %v544_v13 }
 0x2b9   :  { %v2217_v15 = vpop.f32.mrf.mxu1 }
 0x2ba   :  { %v1095_v16 = vsel %vm473_vm7, %v1087_v14, -inf }
 0x2bb   :  { %1096 = vmax.xlane.f32.xlu0 %v1095_v16 }
 0x2c3   :  { %v621_v17 = vpop.f32.mrf.mxu1 }
 0x2c4   :  { %v1088_v18 = vmul.f32 0.35355338, %v621_v17 }
 0x2c5   :  { %v2222_v19 = vpop.f32.mrf.mxu1 }
 0x2c6   :  { %v1098_v20 = vsel %vm473_vm7, %v1088_v18, -inf }
 0x2c7   :  { %1099 = vmax.xlane.f32.xlu1 %v1098_v20 }
 0x2cf   :  { %v698_v21 = vpop.f32.mrf.mxu1 }
 0x2d0   :  { %v2651_v22 = vmul.f32 0.35355338, %v698_v21 }
 0x2d1   :  { %v2227_v23 = vpop.f32.mrf.mxu1 }
 0x2d2   :  { %v1101_v24 = vsel %vm473_vm7, %v2651_v22, -inf }
 0x2d3   :  { %1102 = vmax.xlane.f32.xlu0 %v1101_v24  ;;  %v852_v25 = vpop.f32.mrf.mxu0 }
 0x2d4   :  { %v1091_v26 = vmul.f32 0.35355338, %v852_v25 }
 0x2d5   :  { %v2237_v27 = vpop.f32.mrf.mxu0 }
 0x2d6   :  { %v1107_v28 = vsel %vm473_vm7, %v1091_v26, -inf }
 0x2d7   :  { %1108 = vmax.xlane.f32.xlu1 %v1107_v28 }
 0x2db   :  { %v775_v29 = vpop.f32.mrf.mxu1 }
 0x2dc   :  { %v1090_v30 = vmul.f32 0.35355338, %v775_v29 }
 0x2dd   :  { %v2232_v31 = vpop.f32.mrf.mxu1 }
 0x2de   :  { %v1104_v32 = vsel %vm473_vm7, %v1090_v30, -inf }
 0x2df   :  { %1105 = vmax.xlane.f32.xlu0 %v1104_v32  ;;  %v929_v33 = vpop.f32.mrf.mxu1 }
 0x2e0   :  { %v1092_v34 = vmul.f32 0.35355338, %v929_v33 }
 0x2e1   :  { %v2242_v35 = vpop.f32.mrf.mxu1 }
 0x2e2   :  { %v1110_v36 = vsel %vm473_vm7, %v1092_v34, -inf  ;;  %v1006_v37 = vpop.f32.mrf.mxu0 }
 0x2e3   :  { %1111 = vmax.xlane.f32.xlu0 %v1110_v36  ;;  %v1083_v38 = vpop.f32.mrf.mxu1  ;;  %v1093_v39 = vmul.f32 0.35355338, %v1006_v37 }
 0x2e4   :  { %v1094_v40 = vmul.f32 0.35355338, %v1083_v38  ;;  %v2247_v41 = vpop.f32.mrf.mxu0 }
 0x2e5   :  { %v2252_v43 = vpop.f32.mrf.mxu1  ;;  %v1113_v45 = vsel %vm473_vm7, %v1093_v39, -inf }
 0x2e6   :  { %v1116_v44 = vsel %vm473_vm7, %v1094_v40, -inf  ;;  %1114 = vmax.xlane.f32.xlu1 %v1113_v45 }
 0x2e7   :  { %1117 = vmax.xlane.f32.xlu0 %v1116_v44 }
 0x2f7   :  { %1183 = vrot.lane.b32.xlu1 %v2549_v42, %s2382_s17 }
 0x2fb   :  { %1335 = vrot.lane.b32.xlu1 %v2569_v56, %s2382_s17 }
 0x2fd   :  { %1259 = vrot.lane.b32.xlu0 %v2559_v49, %s2382_s17 }
 0x2ff   :  { %1411 = vrot.lane.b32.xlu1 %v2583_v0, %s2382_s17 }
 0x301   :  { %1487 = vrot.lane.b32.xlu0 %v2575_v59, %s2382_s17 }
 0x303   :  { %1563 = vrot.lane.b32.xlu1 %v2589_v1, %s2382_s17 }
 0x344   :  { %v1097_v42 = vpop.xlane.xlu0 %1096 }
 0x345   :  { %v1119_v50 = vsub.f32 %v1087_v14, %v1097_v42 }
 0x347   :  { %v1127_v49 = vmul.f32 1.442695, %v1119_v50 }
 0x350   :  { %v1100_v46 = vpop.xlane.xlu1 %1099 }
 0x351   :  { %v1120_v47 = vsub.f32 %v1088_v18, %v1100_v46 }
 0x353   :  { %v1129_v48 = vmul.f32 1.442695, %v1120_v47 }
 0x355   :  { %2316 = vpow2.f32 %v1129_v48 }
 0x35c   :  { %v1103_v56 = vpop.xlane.xlu0 %1102 }
 0x35d   :  { %v1121_v62 = vsub.f32 %v2651_v22, %v1103_v56 }
 0x35f   :  { %v1131_v7 = vmul.f32 1.442695, %v1121_v62 }
 0x360   :  { %v1109_v51 = vpop.xlane.xlu1 %1108 }
 0x361   :  { %v1123_v52 = vsub.f32 %v1091_v26, %v1109_v51 }
 0x362   :  { %v2672_v53 = vpop.eup %2316 }
 0x363   :  { %v1135_v54 = vmul.f32 1.442695, %v1123_v52  ;;  %v1146_v55 = vsel %vm473_vm7, %v2672_v53, 0.0 }
 0x364   :  { %1147 = vadd.xlane.f32.xlu0 %v1146_v55 }
 0x365   :  { %2318 = vpow2.f32 %v1135_v54 }
 0x366   :  { %2320 = vpow2.f32 %v1127_v49 }
 0x368   :  { %v1106_v57 = vpop.xlane.xlu0 %1105 }
 0x369   :  { %v1122_v58 = vsub.f32 %v1090_v30, %v1106_v57 }
 0x36b   :  { %v1133_v59 = vmul.f32 1.442695, %v1122_v58 }
 0x36c   :  { %v1112_v60 = vpop.xlane.xlu0 %1111 }
 0x36d   :  { %2322 = vpow2.f32 %v1133_v59  ;;  %v1124_v61 = vsub.f32 %v1092_v34, %v1112_v60 }
 0x36f   :  { %v1137_v63 = vmul.f32 1.442695, %v1124_v61  ;;  %v1115_v0 = vpop.xlane.xlu1 %1114 }
 0x370   :  { %v1118_v1 = vpop.xlane.xlu0 %1117  ;;  %v1125_v4 = vsub.f32 %v1093_v39, %v1115_v0 }
 0x371   :  { %2324 = vpow2.f32 %v1137_v63  ;;  %v1126_v5 = vsub.f32 %v1094_v40, %v1118_v1 }
 0x372   :  { %v2677_v6 = vpop.eup %2318  ;;  %v1139_v8 = vmul.f32 1.442695, %v1125_v4 }
 0x373   :  { %v1141_v10 = vmul.f32 1.442695, %v1126_v5  ;;  %v1155_v11 = vsel %vm473_vm7, %v2677_v6, 0.0  ;;  %v2321_v12 = vpop.eup %2320  ;;  %v1184_v13 = vpop.permute.xlu1 %1183 }
 0x374   :  { %1156 = vadd.xlane.f32.xlu1 %v1155_v11  ;;  %v1260_v14 = vpop.permute.xlu0 %1259  ;;  %2326 = vpow2.f32 %v1139_v8  ;;  %2254 = vmatpush3.msra.mxu0 %v1184_v13  ;;  %v1143_v15 = vsel %vm473_vm7, %v2321_v12, 0.0  ;;  %v1971_v8 = vld [vmem:[%s2861_s3 + $0x10] sm:$0xff]  ;;  %v1969_v11 = vld [vmem:[%s2861_s3] sm:$0xff] }
 0x375   :  { %2259 = vmatpush3.msra.mxu1 %v1260_v14  ;;  %2328 = vpow2.f32 %v1141_v10  ;;  %2263 = vmatprep.subr.mxu0 %v2379_v9  ;;  %v1970_v10 = vld [vmem:[%s2861_s3 + $0x8] sm:$0xff] }
 0x376   :  { %2268 = vmatprep.subr.mxu1 %v2379_v9  ;;  %2330 = vpow2.f32 %v1131_v7  ;;  %v1972_v7 = vld [vmem:[%s2861_s3 + $0x18] sm:$0xff] }
 0x377   :  { %v1336_v27 = vpop.permute.xlu1 %1335 }
 0x378   :  { %1144 = vadd.xlane.f32.xlu1 %v1143_v15  ;;  %v1488_v26 = vpop.permute.xlu0 %1487 }
 0x37a   :  { %v2323_v16 = vpop.eup %2322 }
 0x37b   :  { %v1152_v17 = vsel %vm473_vm7, %v2323_v16, 0.0  ;;  %v1412_v29 = vpop.permute.xlu1 %1411 }
 0x37c   :  { %1153 = vadd.xlane.f32.xlu0 %v1152_v17 }
 0x37e   :  { %v2325_v18 = vpop.eup %2324 }
 0x37f   :  { %v1158_v19 = vsel %vm473_vm7, %v2325_v18, 0.0  ;;  %v1564_v30 = vpop.permute.xlu1 %1563 }
 0x380   :  { %1159 = vadd.xlane.f32.xlu0 %v1158_v19 }
 0x381   :  { %v2686_v20 = vpop.eup %2326 }
 0x382   :  { %v2329_v21 = vpop.eup %2328  ;;  %v1161_v22 = vsel %vm473_vm7, %v2686_v20, 0.0 }
 0x383   :  { %v2331_v23 = vpop.eup %2330  ;;  %1162 = vadd.xlane.f32.xlu1 %v1161_v22  ;;  %v1164_v24 = vsel %vm473_vm7, %v2329_v21, 0.0 }
 0x384   :  { %1165 = vadd.xlane.f32.xlu0 %v1164_v24  ;;  %v1149_v25 = vsel %vm473_vm7, %v2331_v23, 0.0 }
 0x387   :  { %1150 = vadd.xlane.f32.xlu1 %v1149_v25 }
 0x398   :  { %1715 = vrot.lane.b32.xlu1 %v2593_v2, %s2382_s17 }
 0x39a   :  { %1639 = vrot.lane.b32.xlu0 %v2595_v3, %s2382_s17 }
 0x3ed   :  { %v1148_v28 = vpop.xlane.xlu0 %1147 }
 0x3ee   :  { %2332 = vrcp.f32 %v1148_v28 }
 0x3fb   :  { %v2333_v31 = vpop.eup %2332 }
 0x3fc   :  { %v1170_v32 = vmul.f32 %v2333_v31, %v2672_v53 }
 0x3fd   :  { %v1157_v33 = vpop.xlane.xlu1 %1156 }
 0x3fe   :  { %2261 = vmatmul.mubr.msk.f32.vlgmr.msra.gmra.mxu1 %vm473_vm7, %v1170_v32 }
 0x3ff   :  { %2269 = vmatpush3.msra.mxu1 %v1412_v29  ;;  %2270 = vmatprep.mubr.msk.f32.mxu1 %vm2380_vm6, %v2379_v9 }
 0x400   :  { %2278 = vmatprep.subr.mxu1 %v2379_v9 }
 0x401   :  { %v1145_v2 = vpop.xlane.xlu1 %1144 }
 0x402   :  { %2334 = vrcp.f32 %v1145_v2 }
 0x405   :  { %v1154_v3 = vpop.xlane.xlu0 %1153 }
 0x406   :  { %2336 = vrcp.f32 %v1154_v3 }
 0x409   :  { %v1160_v34 = vpop.xlane.xlu0 %1159 }
 0x40a   :  { %2338 = vrcp.f32 %v1160_v34 }
 0x40c   :  { %v1163_v35 = vpop.xlane.xlu1 %1162 }
 0x40d   :  { %v1166_v36 = vpop.xlane.xlu0 %1165 }
 0x40e   :  { %2340 = vrcp.f32 %v1166_v36 }
 0x40f   :  { %v2335_v37 = vpop.eup %2334 }
 0x410   :  { %v1168_v38 = vmul.f32 %v2335_v37, %v2321_v12  ;;  %v1151_v39 = vpop.xlane.xlu1 %1150 }
 0x411   :  { %2342 = vrcp.f32 %v1151_v39  ;;  %v1640_v53 = vpop.permute.xlu0 %1639 }
 0x412   :  { %2256 = vmatmul.mubr.msk.f32.vlgmr.msra.gmra.mxu0 %vm473_vm7, %v1168_v38  ;;  %2344 = vrcp.f32 %v1157_v33 }
 0x413   :  { %v2337_v40 = vpop.eup %2336  ;;  %2264 = vmatpush3.msra.mxu0 %v1336_v27  ;;  %2265 = vmatprep.mubr.msk.f32.mxu0 %vm2380_vm6, %v2379_v9  ;;  %2346 = vrcp.f32 %v1163_v35 }
 0x414   :  { %v1174_v41 = vmul.f32 %v2337_v40, %v2323_v16  ;;  %2273 = vmatprep.subr.mxu0 %v2379_v9  ;;  %v1716_v45 = vpop.permute.xlu1 %1715 }
 0x416   :  { %2271 = vmatmul.mubr.msk.f32.vlgmr.msra.gmra.mxu1 %vm473_vm7, %v1174_v41 }
 0x417   :  { %v2339_v43 = vpop.eup %2338  ;;  %2279 = vmatpush3.msra.mxu1 %v1564_v30  ;;  %2280 = vmatprep.mubr.msk.f32.mxu1 %vm2380_vm6, %v2379_v9 }
 0x418   :  { %2288 = vmatprep.subr.mxu1 %v2379_v9  ;;  %v1178_v44 = vmul.f32 %v2339_v43, %v2325_v18 }
 0x41a   :  { %2281 = vmatmul.mubr.msk.f32.vlgmr.msra.gmra.mxu1 %vm473_vm7, %v1178_v44 }
 0x41b   :  { %2289 = vmatpush3.msra.mxu1 %v1716_v45  ;;  %2290 = vmatprep.mubr.msk.f32.mxu1 %vm2380_vm6, %v2379_v9  ;;  %v2341_v46 = vpop.eup %2340  ;;  %v2153_v45 = vld [vmem:[%s2862_s4] ss:$0 sm:$0xff] }
 0x41c   :  { %v1182_v47 = vmul.f32 %v2341_v46, %v2329_v21 }
 0x41e   :  { %v2343_v48 = vpop.eup %2342  ;;  %2291 = vmatmul.mubr.msk.f32.vlgmr.msra.gmra.mxu1 %vm473_vm7, %v1182_v47 }
 0x41f   :  { %v1172_v42 = vmul.f32 %v2343_v48, %v2331_v23  ;;  %v2345_v50 = vpop.eup %2344 }
 0x420   :  { %v1176_v51 = vmul.f32 %v2345_v50, %v2677_v6  ;;  %v2347_v52 = vpop.eup %2346 }
 0x421   :  { %2266 = vmatmul.mubr.msk.f32.vlgmr.msra.gmra.mxu0 %vm473_vm7, %v1172_v42  ;;  %v1180_v49 = vmul.f32 %v2347_v52, %v2686_v20  ;;  %v2352_v42 = vld [vmem:[%s2858_s0 + $0x8] sm:$0xff]  ;;  %v2353_v52 = vld [vmem:[%s2858_s0] sm:$0xff] }
 0x422   :  { %2274 = vmatpush3.msra.mxu0 %v1488_v26  ;;  %2275 = vmatprep.mubr.msk.f32.mxu0 %vm2380_vm6, %v2379_v9 }
 0x423   :  { %2283 = vmatprep.subr.mxu0 %v2379_v9 }
 0x425   :  { %2276 = vmatmul.mubr.msk.f32.vlgmr.msra.gmra.mxu0 %vm473_vm7, %v1176_v51 }
 0x426   :  { %2284 = vmatpush3.msra.mxu0 %v1640_v53  ;;  %2285 = vmatprep.mubr.msk.f32.mxu0 %vm2380_vm6, %v2379_v9 }
 0x427   :  { %2293 = vmatprep.subr.mxu0 %v1972_v7 }
 0x429   :  { %2286 = vmatmul.mubr.msk.f32.vlgmr.msra.gmra.mxu0 %vm473_vm7, %v1180_v49 }
 0x42a   :  { %2294 = vmatpush3.msra.mxu0 %v1972_v7 }
 0x42b   :  { %2295 = vmatprep.subr.mxu0 %v1971_v8 }
 0x42c   :  { %2296 = vmatpush3.msra.mxu0 %v1971_v8 }
 0x42d   :  { %2297 = vmatprep.subr.mxu0 %v1970_v10 }
 0x42e   :  { %2298 = vmatpush3.msra.mxu0 %v1970_v10  ;;  %v2156_v10 = vld [vmem:[%s2863_s5] ss:$0 sm:$0xff] }
 0x42f   :  { %2299 = vmatprep.subr.mxu0 %v1969_v11 }
 0x430   :  { %2300 = vmatpush3.msra.mxu0 %v1969_v11 }
 0x4be   :  { %v1331_v54 = vpop.f32.mrf.mxu1 }
 0x4bf   :  { %1810 = vrot.lane.b32.xlu1 %v1331_v54, %s2383_s18  ;;  %1793 = vst.msk [vmem:[#allocation4 + $0x2] sm:$0x1] %vm1791_vm8, %v1331_v54 }
 0x4c0   :  { %1909 = vst.msk [vmem:[#allocation4 - $0x1] sm:$0x10] %vm1907_vm9, %v1331_v54  ;;  %v2262_v55 = vpop.f32.mrf.mxu1 }
 0x4c3   :  { %1843 = vrot.lane.b32.xlu1 %v1331_v54, %s2384_s19 }
 0x4c7   :  { %1876 = vrot.lane.b32.xlu1 %v1331_v54, %s2385_s20 }
 0x4d2   :  { %v1255_v9 = vpop.f32.mrf.mxu0 }
 0x4d3   :  { %1808 = vrot.lane.b32.xlu0 %v1255_v9, %s2383_s18  ;;  %1792 = vst.msk [vmem:[#allocation4] sm:$0x1] %vm1791_vm8, %v1255_v9 }
 0x4d4   :  { %1908 = vst.msk [vmem:[#allocation4 - $0x3] sm:$0x10] %vm1907_vm9, %v1255_v9  ;;  %v2257_v56 = vpop.f32.mrf.mxu0 }
 0x4d6   :  { %v1483_v57 = vpop.f32.mrf.mxu1 }
 0x4d7   :  { %1841 = vrot.lane.b32.xlu0 %v1255_v9, %s2384_s19  ;;  %1814 = vrot.lane.b32.xlu1 %v1483_v57, %s2383_s18  ;;  %1795 = vst.msk [vmem:[#allocation4 + $0x6] sm:$0x1] %vm1791_vm8, %v1483_v57 }
 0x4d8   :  { %1911 = vst.msk [vmem:[#allocation4 + $0x3] sm:$0x10] %vm1907_vm9, %v1483_v57  ;;  %v2272_v58 = vpop.f32.mrf.mxu1 }
 0x4da   :  { %v1635_v59 = vpop.f32.mrf.mxu1 }
 0x4db   :  { %1874 = vrot.lane.b32.xlu0 %v1255_v9, %s2385_s20  ;;  %1847 = vrot.lane.b32.xlu1 %v1483_v57, %s2384_s19  ;;  %1797 = vst.msk [vmem:[#allocation4 + $0xa] sm:$0x1] %vm1791_vm8, %v1635_v59 }
 0x4dc   :  { %1913 = vst.msk [vmem:[#allocation4 + $0x7] sm:$0x10] %vm1907_vm9, %v1635_v59  ;;  %v2282_v60 = vpop.f32.mrf.mxu1 }
 0x4de   :  { %v1787_v61 = vpop.f32.mrf.mxu1 }
 0x4df   :  { %1880 = vrot.lane.b32.xlu1 %v1483_v57, %s2385_s20  ;;  %1799 = vst.msk [vmem:[#allocation4 + $0xe] sm:$0x1] %vm1791_vm8, %v1787_v61 }
 0x4e0   :  { %1915 = vst.msk [vmem:[#allocation4 + $0xb] sm:$0x10] %vm1907_vm9, %v1787_v61  ;;  %v2292_v62 = vpop.f32.mrf.mxu1 }
 0x4e1   :  { %v1407_v63 = vpop.f32.mrf.mxu0 }
 0x4e2   :  { %1812 = vrot.lane.b32.xlu0 %v1407_v63, %s2383_s18  ;;  %1794 = vst.msk [vmem:[#allocation4 + $0x4] sm:$0x1] %vm1791_vm8, %v1407_v63 }
 0x4e3   :  { %1818 = vrot.lane.b32.xlu1 %v1635_v59, %s2383_s18  ;;  %1910 = vst.msk [vmem:[#allocation4 + $0x1] sm:$0x10] %vm1907_vm9, %v1407_v63  ;;  %v2267_v0 = vpop.f32.mrf.mxu0 }
 0x4e5   :  { %v1559_v1 = vpop.f32.mrf.mxu0 }
 0x4e6   :  { %1845 = vrot.lane.b32.xlu0 %v1407_v63, %s2384_s19  ;;  %1796 = vst.msk [vmem:[#allocation4 + $0x8] sm:$0x1] %vm1791_vm8, %v1559_v1 }
 0x4e7   :  { %1851 = vrot.lane.b32.xlu1 %v1635_v59, %s2384_s19  ;;  %1912 = vst.msk [vmem:[#allocation4 + $0x5] sm:$0x10] %vm1907_vm9, %v1559_v1  ;;  %v2277_v4 = vpop.f32.mrf.mxu0 }
 0x4e9   :  { %v1711_v5 = vpop.f32.mrf.mxu0 }
 0x4ea   :  { %1878 = vrot.lane.b32.xlu0 %v1407_v63, %s2385_s20  ;;  %1798 = vst.msk [vmem:[#allocation4 + $0xc] sm:$0x1] %vm1791_vm8, %v1711_v5 }
 0x4eb   :  { %1884 = vrot.lane.b32.xlu1 %v1635_v59, %s2385_s20  ;;  %1914 = vst.msk [vmem:[#allocation4 + $0x9] sm:$0x10] %vm1907_vm9, %v1711_v5  ;;  %v2287_v6 = vpop.f32.mrf.mxu0 }
 0x4ee   :  { %1816 = vrot.lane.b32.xlu0 %v1559_v1, %s2383_s18 }
 0x4ef   :  { %1822 = vrot.lane.b32.xlu1 %v1787_v61, %s2383_s18 }
 0x4f2   :  { %1849 = vrot.lane.b32.xlu0 %v1559_v1, %s2384_s19 }
 0x4f3   :  { %1855 = vrot.lane.b32.xlu1 %v1787_v61, %s2384_s19 }
 0x4f6   :  { %1882 = vrot.lane.b32.xlu0 %v1559_v1, %s2385_s20 }
 0x4f7   :  { %1888 = vrot.lane.b32.xlu1 %v1787_v61, %s2385_s20 }
 0x4fa   :  { %1820 = vrot.lane.b32.xlu0 %v1711_v5, %s2383_s18 }
 0x4fe   :  { %1853 = vrot.lane.b32.xlu0 %v1711_v5, %s2384_s19 }
 0x502   :  { %1886 = vrot.lane.b32.xlu0 %v1711_v5, %s2385_s20 }
 0x531   :  { %v1811_v12 = vpop.permute.xlu1 %1810 }
 0x532   :  { %1834 = vst.msk [vmem:[#allocation4 + $0x1] sm:$0x2] %vm1832_vm10, %v1811_v12 }
 0x533   :  { %1918 = vst.msk [vmem:[#allocation4 - $0x2] sm:$0x20] %vm1916_vm11, %v1811_v12  ;;  %v2157_v12 = vld [vmem:[%s2864_s6] ss:$0 sm:$0xff] }
 0x535   :  { %v1844_v13 = vpop.permute.xlu1 %1843 }
 0x536   :  { %1867 = vst.msk [vmem:[#allocation4] sm:$0x4] %vm1865_vm12, %v1844_v13 }
 0x537   :  { %1927 = vst.msk [vmem:[#allocation4 - $0x3] sm:$0x40] %vm1925_vm13, %v1844_v13 }
 0x539   :  { %v1877_v14 = vpop.permute.xlu1 %1876 }
 0x53a   :  { %1900 = vst.msk [vmem:[#allocation4 - $0x1] sm:$0x8] %vm1898_vm14, %v1877_v14 }
 0x53b   :  { %1936 = vst.msk [vmem:[#allocation4 - $0x4] sm:$0x80] %vm1934_vm15, %v1877_v14 }
 0x542   :  { %v1947_v15 = vld [vmem:[#allocation4 + $0x2] sm:$0x3] }
 0x543   :  { %1948 = vst.msk [vmem:[#allocation5 + $0x2] sm:$0x3] %vm1944_vm1, %v1947_v15 }
 0x545   :  { %v1809_v16 = vpop.permute.xlu0 %1808 }
 0x546   :  { %1833 = vst.msk [vmem:[#allocation4 - $0x1] sm:$0x2] %vm1832_vm10, %v1809_v16 }
 0x547   :  { %1917 = vst.msk [vmem:[#allocation4 - $0x4] sm:$0x20] %vm1916_vm11, %v1809_v16 }
 0x549   :  { %v1815_v17 = vpop.permute.xlu1 %1814  ;;  %v1842_v18 = vpop.permute.xlu0 %1841 }
 0x54a   :  { %1836 = vst.msk [vmem:[#allocation4 + $0x5] sm:$0x2] %vm1832_vm10, %v1815_v17 }
 0x54b   :  { %1920 = vst.msk [vmem:[#allocation4 + $0x2] sm:$0x20] %vm1916_vm11, %v1815_v17 }
 0x54c   :  { %1866 = vst.msk [vmem:[#allocation4 - $0x2] sm:$0x4] %vm1865_vm12, %v1842_v18 }
 0x54d   :  { %1926 = vst.msk [vmem:[#allocation4 - $0x5] sm:$0x40] %vm1925_vm13, %v1842_v18  ;;  %v1848_v19 = vpop.permute.xlu1 %1847  ;;  %v1875_v20 = vpop.permute.xlu0 %1874 }
 0x54e   :  { %1869 = vst.msk [vmem:[#allocation4 + $0x4] sm:$0x4] %vm1865_vm12, %v1848_v19 }
 0x54f   :  { %1929 = vst.msk [vmem:[#allocation4 + $0x1] sm:$0x40] %vm1925_vm13, %v1848_v19 }
 0x550   :  { %1899 = vst.msk [vmem:[#allocation4 - $0x3] sm:$0x8] %vm1898_vm14, %v1875_v20 }
 0x551   :  { %1935 = vst.msk [vmem:[#allocation4 - $0x6] sm:$0x80] %vm1934_vm15, %v1875_v20  ;;  %v1881_v21 = vpop.permute.xlu1 %1880 }
 0x552   :  { %1902 = vst.msk [vmem:[#allocation4 + $0x3] sm:$0x8] %vm1898_vm14, %v1881_v21 }
 0x553   :  { %1938 = vst.msk [vmem:[#allocation4] sm:$0x80] %vm1934_vm15, %v1881_v21 }
 0x554   :  { %v1813_v24 = vpop.permute.xlu0 %1812 }
 0x555   :  { %v1819_v23 = vpop.permute.xlu1 %1818  ;;  %1835 = vst.msk [vmem:[#allocation4 + $0x3] sm:$0x2] %vm1832_vm10, %v1813_v24 }
 0x556   :  { %1838 = vst.msk [vmem:[#allocation4 + $0x9] sm:$0x2] %vm1832_vm10, %v1819_v23 }
 0x557   :  { %1922 = vst.msk [vmem:[#allocation4 + $0x6] sm:$0x20] %vm1916_vm11, %v1819_v23  ;;  %1919 = vst.msk [vmem:[#allocation4] sm:$0x20] %vm1916_vm11, %v1813_v24 }
 0x558   :  { %v1943_v22 = vld [vmem:[#allocation4] sm:$0x3]  ;;  %v1846_v27 = vpop.permute.xlu0 %1845 }
 0x559   :  { %1945 = vst.msk [vmem:[#allocation5] sm:$0x3] %vm1944_vm1, %v1943_v22  ;;  %v1852_v26 = vpop.permute.xlu1 %1851 }
 0x55a   :  { %v1953_v25 = vld [vmem:[#allocation4 + $0x6] sm:$0x3]  ;;  %1871 = vst.msk [vmem:[#allocation4 + $0x8] sm:$0x4] %vm1865_vm12, %v1852_v26  ;;  %1868 = vst.msk [vmem:[#allocation4 + $0x2] sm:$0x4] %vm1865_vm12, %v1846_v27 }
 0x55b   :  { %1954 = vst.msk [vmem:[#allocation5 + $0x6] sm:$0x3] %vm1944_vm1, %v1953_v25 }
 0x55c   :  { %1931 = vst.msk [vmem:[#allocation4 + $0x5] sm:$0x40] %vm1925_vm13, %v1852_v26  ;;  %1928 = vst.msk [vmem:[#allocation4 - $0x1] sm:$0x40] %vm1925_vm13, %v1846_v27  ;;  %v1879_v29 = vpop.permute.xlu0 %1878 }
 0x55d   :  { %v1885_v28 = vpop.permute.xlu1 %1884  ;;  %1901 = vst.msk [vmem:[#allocation4 + $0x1] sm:$0x8] %vm1898_vm14, %v1879_v29 }
 0x55e   :  { %1904 = vst.msk [vmem:[#allocation4 + $0x7] sm:$0x8] %vm1898_vm14, %v1885_v28 }
 0x55f   :  { %1940 = vst.msk [vmem:[#allocation4 + $0x4] sm:$0x80] %vm1934_vm15, %v1885_v28  ;;  %1937 = vst.msk [vmem:[#allocation4 - $0x2] sm:$0x80] %vm1934_vm15, %v1879_v29 }
 0x560   :  { %v1817_v31 = vpop.permute.xlu0 %1816 }
 0x561   :  { %v1823_v30 = vpop.permute.xlu1 %1822  ;;  %1837 = vst.msk [vmem:[#allocation4 + $0x7] sm:$0x2] %vm1832_vm10, %v1817_v31 }
 0x562   :  { %1840 = vst.msk [vmem:[#allocation4 + $0xd] sm:$0x2] %vm1832_vm10, %v1823_v30 }
 0x563   :  { %1924 = vst.msk [vmem:[#allocation4 + $0xa] sm:$0x20] %vm1916_vm11, %v1823_v30  ;;  %1921 = vst.msk [vmem:[#allocation4 + $0x4] sm:$0x20] %vm1916_vm11, %v1817_v31 }
 0x564   :  { %v1850_v3 = vpop.permute.xlu0 %1849 }
 0x565   :  { %v1856_v2 = vpop.permute.xlu1 %1855  ;;  %1870 = vst.msk [vmem:[#allocation4 + $0x6] sm:$0x4] %vm1865_vm12, %v1850_v3 }
 0x566   :  { %v1959_v32 = vld [vmem:[#allocation4 + $0xa] sm:$0x3]  ;;  %v1950_v33 = vld [vmem:[#allocation4 + $0x4] sm:$0x3]  ;;  %1873 = vst.msk [vmem:[#allocation4 + $0xc] sm:$0x4] %vm1865_vm12, %v1856_v2 }
 0x567   :  { %1960 = vst.msk [vmem:[#allocation5 + $0xa] sm:$0x3] %vm1944_vm1, %v1959_v32  ;;  %1951 = vst.msk [vmem:[#allocation5 + $0x4] sm:$0x3] %vm1944_vm1, %v1950_v33 }
 0x568   :  { %1933 = vst.msk [vmem:[#allocation4 + $0x9] sm:$0x40] %vm1925_vm13, %v1856_v2  ;;  %1930 = vst.msk [vmem:[#allocation4 + $0x3] sm:$0x40] %vm1925_vm13, %v1850_v3  ;;  %v1883_v35 = vpop.permute.xlu0 %1882 }
 0x569   :  { %v1889_v34 = vpop.permute.xlu1 %1888  ;;  %1903 = vst.msk [vmem:[#allocation4 + $0x5] sm:$0x8] %vm1898_vm14, %v1883_v35 }
 0x56a   :  { %1906 = vst.msk [vmem:[#allocation4 + $0xb] sm:$0x8] %vm1898_vm14, %v1889_v34 }
 0x56b   :  { %1942 = vst.msk [vmem:[#allocation4 + $0x8] sm:$0x80] %vm1934_vm15, %v1889_v34  ;;  %1939 = vst.msk [vmem:[#allocation4 + $0x2] sm:$0x80] %vm1934_vm15, %v1883_v35 }
 0x56c   :  { %v1821_v36 = vpop.permute.xlu0 %1820 }
 0x56d   :  { %1839 = vst.msk [vmem:[#allocation4 + $0xb] sm:$0x2] %vm1832_vm10, %v1821_v36 }
 0x56e   :  { %v1967_v37 = vld [vmem:[#allocation5] sm:$0xff]  ;;  %1923 = vst.msk [vmem:[#allocation4 + $0x8] sm:$0x20] %vm1916_vm11, %v1821_v36 }
 0x56f   :  { %2301 = vmatprep.mubr.msk.f32.mxu0 %vm40_vm0, %v1967_v37 }
 0x570   :  { %v1854_v40 = vpop.permute.xlu0 %1853 }
 0x571   :  { %1872 = vst.msk [vmem:[#allocation4 + $0xa] sm:$0x4] %vm1865_vm12, %v1854_v40 }
 0x572   :  { %v1965_v38 = vld [vmem:[#allocation4 + $0xe] sm:$0x3]  ;;  %v1956_v39 = vld [vmem:[#allocation4 + $0x8] sm:$0x3]  ;;  %1932 = vst.msk [vmem:[#allocation4 + $0x7] sm:$0x40] %vm1925_vm13, %v1854_v40 }
 0x573   :  { %1966 = vst.msk [vmem:[#allocation5 + $0xe] sm:$0x3] %vm1944_vm1, %v1965_v38  ;;  %1957 = vst.msk [vmem:[#allocation5 + $0x8] sm:$0x3] %vm1944_vm1, %v1956_v39 }
 0x574   :  { %v1887_v41 = vpop.permute.xlu0 %1886 }
 0x575   :  { %1905 = vst.msk [vmem:[#allocation4 + $0x9] sm:$0x8] %vm1898_vm14, %v1887_v41 }
 0x576   :  { %1941 = vst.msk [vmem:[#allocation4 + $0x6] sm:$0x80] %vm1934_vm15, %v1887_v41 }
 0x57d   :  { %v1962_v43 = vld [vmem:[#allocation4 + $0xc] sm:$0x3] }
 0x57e   :  { %1963 = vst.msk [vmem:[#allocation5 + $0xc] sm:$0x3] %vm1944_vm1, %v1962_v43 }
 0x585   :  { %v1968_v44 = vld [vmem:[#allocation5 + $0x8] sm:$0xff] }
 0x586   :  { %2302 = vmatmul.mubr.msk.f32.vlgmr.msra.gmra.mxu0 %vm40_vm0, %v1968_v44 }
 0x646   :  { %v2303_v46 = vpop.f32.mrf.mxu0 }
 0x647   :  { %v2058_v47 = vadd.f32 %v2303_v46, %v2153_v45 }
 0x648   :  { %v2052_v48 = vpop.f32.mrf.mxu0 }
 0x649   :  { %v2062_v50 = vadd.f32 %v2352_v42, %v2058_v47  ;;  %v2053_v51 = vadd.f32 %v2153_v45, %v2052_v48 }
 0x64b   :  { %v2061_v53 = vadd.f32 %v2353_v52, %v2053_v51  ;;  %v2066_v49 = vsel %vm40_vm0, %v2062_v50, 0.0 }
 0x64c   :  { %2067 = vadd.xlane.f32.xlu1 %v2066_v49 }
 0x64d   :  { %v2063_v54 = vsel %vm40_vm0, %v2061_v53, 0.0 }
 0x64e   :  { %2064 = vadd.xlane.f32.xlu0 %v2063_v54 }
 0x6d5   :  { %v2068_v55 = vpop.xlane.xlu1 %2067 }
 0x6d6   :  { %v2071_v9 = vmul.f32 0.03125, %v2068_v55 }
 0x6d7   :  { %v2065_v56 = vpop.xlane.xlu0 %2064 }
 0x6d8   :  { %v2070_v57 = vmul.f32 0.03125, %v2065_v56  ;;  %v2073_v58 = vsub.f32 %v2062_v50, %v2071_v9 }
 0x6da   :  { %v2072_v59 = vsub.f32 %v2061_v53, %v2070_v57  ;;  %v2075_v62 = vmul.f32 %v2073_v58, %v2073_v58 }
 0x6dc   :  { %v2074_v60 = vmul.f32 %v2072_v59, %v2072_v59  ;;  %v2079_v63 = vsel %vm40_vm0, %v2075_v62, 0.0 }
 0x6de   :  { %v2076_v61 = vsel %vm40_vm0, %v2074_v60, 0.0 }
 0x6df   :  { %2077 = vadd.xlane.f32.xlu0 %v2076_v61 }
 0x6e3   :  { %2080 = vadd.xlane.f32.xlu0 %v2079_v63 }
 0x768   :  { %v2078_v0 = vpop.xlane.xlu0 %2077 }
 0x769   :  { %v2082_v1 = vmul.f32 0.03125, %v2078_v0 }
 0x76b   :  { %v2084_v4 = vadd.f32 1e-05, %v2082_v1 }
 0x76c   :  { %v2081_v5 = vpop.xlane.xlu0 %2080 }
 0x76d   :  { %2348 = vrsqrt.f32 %v2084_v4  ;;  %v2083_v6 = vmul.f32 0.03125, %v2081_v5 }
 0x76f   :  { %v2085_v7 = vadd.f32 1e-05, %v2083_v6 }
 0x771   :  { %2350 = vrsqrt.f32 %v2085_v7 }
 0x77a   :  { %v2349_v8 = vpop.eup %2348 }
 0x77b   :  { %v2088_v11 = vmul.f32 %v2349_v8, %v2072_v59 }
 0x77d   :  { %v2097_v13 = vmul.f32 %v2156_v10, %v2088_v11 }
 0x77e   :  { %v2351_v14 = vpop.eup %2350 }
 0x77f   :  { %v2089_v15 = vmul.f32 %v2351_v14, %v2073_v58  ;;  %v2106_v16 = vadd.f32 %v2157_v12, %v2097_v13 }
 0x781   :  { %v2098_v17 = vmul.f32 %v2156_v10, %v2089_v15  ;;  %2108 = vst.msk [vmem:[#allocation6] sm:$0xff] %vm40_vm0, %v2106_v16 }
 0x783   :  { %v2107_v18 = vadd.f32 %v2157_v12, %v2098_v17 }
 0x785   :  { %2109 = vst.msk [vmem:[#allocation6 + $0x8] sm:$0xff] %vm40_vm0, %v2107_v18 }
 0x786   :  { %2365 = shalt.err (!%p2362_p4)
}
 0x787   :  { %s2387_s5 = smov 128  }
 0x788   :  { %2121 = dma.vmem_to_hbm [thread:$0]  %s2116_s14, 256, %s2865_s7, [#allocation7], %s2387_s5, %s2387_s5, %s2383_s18  }
 0x789   :  { %2374 = dma.done.wait [#allocation7], 256  }
 0x78a   :  { %2375 = vsyncadd [#allocation7], 4294967040 }
 0x78b   :  { %2125 = vsyncpa [#allocation7], 1 }

</bundles_post_ra>
